<compile_context>
chip_gen: v7x
topology: tpu7x:2x2x1
jax: 0.10.0
libtpu: 0.0.40
codegen_flags: <defaults>
</compile_context>

<pallas_src>
import functools

import jax
import jax.numpy as jnp
from jax.experimental import pallas as pl
from jax.experimental.pallas import tpu as pltpu


def _fused_conv3_kernel(x_ref, m1_ref, m2_ref, m3_ref, b1_ref, b2_ref, b3_ref,
                        o_ref, s1_ref, s2_ref, s3_ref, *, layers):
    """One batch element per grid step; all three conv layers fused.

    x_ref : (1, 1, H, W)            input image (NCHW, Cin=1)
    mX_ref: (KH*Wp*Cin, Wout*Cout)  banded/expanded weight matrix, layer X
    bX_ref: (1, Wout*Cout)          bias tiled over the Wout positions
    o_ref : (1, Hout3, Wout3*Cout3) final activation, NHWC-flattened rows
    sX_ref: (HoutX, KH*Wp*Cin)      VMEM scratch: row-band stacked input
    """
    m_refs = (m1_ref, m2_ref, m3_ref)
    b_refs = (b1_ref, b2_ref, b3_ref)
    s_refs = (s1_ref, s2_ref, s3_ref)

    # Layer-1 activation in (H, W*Cin) form (Cin == 1).
    a = x_ref[0, 0].astype(jnp.float32)

    for li, (KH, ph, pwC, Hin, WinC, Hout, WpC, relu) in enumerate(layers):
        s = s_refs[li]
        # Zero-init covers the spatial zero-padding of this layer.
        s[...] = jnp.zeros_like(s)
        # Write each overlapping row band of the (implicitly) padded input.
        # S[h, kh*WpC + w'*C + c] = X_pad[h + kh, w', c]
        for kh in range(KH):
            h0 = max(0, ph - kh)
            h1 = min(Hout, ph + Hin - kh)
            if h1 > h0:
                c0 = kh * WpC + pwC
                s[h0:h1, c0:c0 + WinC] = a[h0 + kh - ph:h1 + kh - ph, :]
        # One deep-K matmul per layer on the MXU + bias (+ ReLU).
        a = jnp.dot(s[...], m_refs[li][...],
                    preferred_element_type=jnp.float32)
        a = a + b_refs[li][...]
        if relu:
            a = jnp.maximum(a, 0.0)

    o_ref[0] = a.astype(o_ref.dtype)


def _expand_weight(w_torch, Wp, Wout):
    """PyTorch (Cout,Cin,KH,KW) -> banded matrix (KH*Wp*Cin, Wout*Cout).

    M[(kh*Wp + w')*Cin + c, w*Cout + co] = W[co, c, kh, w' - w]
        if 0 <= w' - w < KW else 0
    so that  Out[h, w*Cout + co] = sum S[h, :] * M[:, w*Cout + co]
    reproduces stride-1 cross-correlation with zero padding.
    """
    Cout, Cin, KH, KW = w_torch.shape
    w_t = jnp.transpose(w_torch, (2, 3, 1, 0)).astype(jnp.float32)  # (KH,KW,Cin,Cout)
    wp = jnp.arange(Wp)[:, None]          # w'
    wo = jnp.arange(Wout)[None, :]        # w
    kw = wp - wo                          # (Wp, Wout)
    valid = (kw >= 0) & (kw < KW)
    kw = jnp.clip(kw, 0, KW - 1)
    m = w_t[:, kw, :, :]                              # (KH, Wp, Wout, Cin, Cout)
    m = jnp.where(valid[None, :, :, None, None], m, 0.0)
    m = jnp.transpose(m, (0, 1, 3, 2, 4))             # (KH, Wp, Cin, Wout, Cout)
    return m.reshape(KH * Wp * Cin, Wout * Cout)


def model_forward(x_nchw, params):
    """Forward pass matching Model.forward (inputs/outputs in NCHW)."""
    x = x_nchw.astype(jnp.float32)
    N, Cin0, H, W = x.shape
    assert Cin0 == 1

    convs = [
        (params["w1"], params["b1"], (4, 8), True),
        (params["w2"], params["b2"], (3, 6), True),
        (params["w3"], params["b3"], (3, 6), False),
    ]

    layer_cfg = []
    m_mats, b_vecs = [], []
    Hin, Win, Cin = H, W, 1
    for w, b, (ph, pw), relu in convs:
        Cout, Cin_w, KH, KW = w.shape
        assert Cin_w == Cin
        Hout = Hin + 2 * ph - KH + 1
        Wout = Win + 2 * pw - KW + 1
        Wp = Win + 2 * pw
        m_mats.append(_expand_weight(w, Wp, Wout))
        b_vecs.append(jnp.tile(b.astype(jnp.float32), Wout).reshape(1, Wout * Cout))
        layer_cfg.append((KH, ph, pw * Cin, Hin, Win * Cin, Hout, Wp * Cin, relu))
        Hin, Win, Cin = Hout, Wout, Cout

    Hout3, Wout3, Cout3 = Hin, Win, Cin
    K = [m.shape[0] for m in m_mats]   # 320 / 1568 / 784 for the demo shapes
    Nc = [m.shape[1] for m in m_mats]  # Wout*Cout per layer

    kernel = functools.partial(_fused_conv3_kernel, layers=tuple(layer_cfg))

    out_flat = pl.pallas_call(
        kernel,
        out_shape=jax.ShapeDtypeStruct((N, Hout3, Wout3 * Cout3), jnp.float32),
        grid=(N,),
        in_specs=[
            pl.BlockSpec((1, 1, H, W), lambda n: (n, 0, 0, 0)),
            pl.BlockSpec((K[0], Nc[0]), lambda n: (0, 0)),
            pl.BlockSpec((K[1], Nc[1]), lambda n: (0, 0)),
            pl.BlockSpec((K[2], Nc[2]), lambda n: (0, 0)),
            pl.BlockSpec((1, Nc[0]), lambda n: (0, 0)),
            pl.BlockSpec((1, Nc[1]), lambda n: (0, 0)),
            pl.BlockSpec((1, Nc[2]), lambda n: (0, 0)),
        ],
        out_specs=pl.BlockSpec((1, Hout3, Wout3 * Cout3), lambda n: (n, 0, 0)),
        scratch_shapes=[
            pltpu.VMEM((layer_cfg[0][5], K[0]), jnp.float32),
            pltpu.VMEM((layer_cfg[1][5], K[1]), jnp.float32),
            pltpu.VMEM((layer_cfg[2][5], K[2]), jnp.float32),
        ],
        compiler_params=pltpu.CompilerParams(dimension_semantics=("parallel",)),
    )(x, m_mats[0], m_mats[1], m_mats[2], b_vecs[0], b_vecs[1], b_vecs[2])

    # Kernel rows are NHWC-flattened: (N, Hout, Wout*Cout) -> NCHW.
    out_nhwc = out_flat.reshape(N, Hout3, Wout3, Cout3)
    if Cout3 == 1:
        return out_nhwc.reshape(N, 1, Hout3, Wout3)   # pure reshape, no transpose
    return jnp.transpose(out_nhwc, (0, 3, 1, 2))


def init_params(key, size=8, scale=2, w_std=0.001, random_bias=False):
    # Module init semantics: every weight element ~ N(0, w_std), bias = 0.
    k = jax.random.split(key, 6)
    w1 = jax.random.normal(k[0], (size, 1, 10, 17), jnp.float32) * w_std
    w2 = jax.random.normal(k[1], (size // 2, size, 7, 13), jnp.float32) * w_std
    w3 = jax.random.normal(k[2], (scale - 1, size // 2, 7, 13), jnp.float32) * w_std
    if random_bias:  # optional: exercise the bias path in the numeric check
        b1 = jax.random.normal(k[3], (size,), jnp.float32) * 0.1
        b2 = jax.random.normal(k[4], (size // 2,), jnp.float32) * 0.1
        b3 = jax.random.normal(k[5], (scale - 1,), jnp.float32) * 0.1
    else:
        b1 = jnp.zeros((size,), jnp.float32)
        b2 = jnp.zeros((size // 2,), jnp.float32)
        b3 = jnp.zeros((scale - 1,), jnp.float32)
    return {"w1": w1, "b1": b1, "w2": w2, "b2": b2, "w3": w3, "b3": b3}


def _reference_conv(x_nhwc, w_torch, bias, padding, relu):
    out = jax.lax.conv_general_dilated(
        x_nhwc, jnp.transpose(w_torch, (2, 3, 1, 0)),
        window_strides=(1, 1),
        padding=[(padding[0], padding[0]), (padding[1], padding[1])],
        dimension_numbers=("NHWC", "HWIO", "NHWC"),
    ) + bias[None, None, None, :]
    return jnp.maximum(out, 0.0) if relu else out


def _reference_forward(x_nchw, p):
    x = jnp.transpose(x_nchw, (0, 2, 3, 1))
    x = _reference_conv(x, p["w1"], p["b1"], (4, 8), True)
    x = _reference_conv(x, p["w2"], p["b2"], (3, 6), True)
    x = _reference_conv(x, p["w3"], p["b3"], (3, 6), False)
    return jnp.transpose(x, (0, 3, 1, 2))


if __name__ == "__main__":
    key = jax.random.PRNGKey(0)
    kx, kp, kq = jax.random.split(key, 3)

    # Small shapes consistent with the module: scale=2, size=8, N=2, 16x16 input.
    size, scale = 8, 2
    x = jax.random.normal(kx, (2, 1, 16, 16), jnp.float32)  # NCHW, Cin=1

    fwd = jax.jit(model_forward)

    # 1) Module-faithful init (tiny weights, zero bias).
    params = init_params(kp, size=size, scale=scale)
    out = jax.block_until_ready(fwd(x, params))
    # Expected output shape: (N, scale-1, H-1, W) = (2, 1, 15, 16)
    assert out.shape == (2, scale - 1, 15, 16), out.shape
    ref = jax.block_until_ready(_reference_forward(x, params))
    assert jnp.allclose(out, ref, atol=1e-5, rtol=1e-4), \
        float(jnp.max(jnp.abs(out - ref)))

    # 2) Stronger numeric check: larger weights and nonzero biases.
    params2 = init_params(kq, size=size, scale=scale, w_std=0.02, random_bias=True)
    out2 = jax.block_until_ready(fwd(x, params2))
    ref2 = jax.block_until_ready(_reference_forward(x, params2))
    assert jnp.allclose(out2, ref2, atol=1e-4, rtol=1e-4), \
        float(jnp.max(jnp.abs(out2 - ref2)))

    print("KERNEL_OK")
</pallas_src>

<mosaic_0001>
module attributes {stable_mosaic.version = 11 : i64} {
  func.func @_fused_conv3_kernel(%arg0: i32, %arg1: memref<1x1x16x16xf32, #tpu.memory_space<vmem>>, %arg2: memref<320x128xf32, #tpu.memory_space<vmem>>, %arg3: memref<1568x64xf32, #tpu.memory_space<vmem>>, %arg4: memref<784x16xf32, #tpu.memory_space<vmem>>, %arg5: memref<1x128xf32, #tpu.memory_space<vmem>>, %arg6: memref<1x64xf32, #tpu.memory_space<vmem>>, %arg7: memref<1x16xf32, #tpu.memory_space<vmem>>, %arg8: memref<1x15x16xf32, #tpu.memory_space<vmem>>, %arg9: memref<15x320xf32, #tpu.memory_space<vmem>>, %arg10: memref<15x1568xf32, #tpu.memory_space<vmem>>, %arg11: memref<15x784xf32, #tpu.memory_space<vmem>>) attributes {dimension_semantics = [#tpu.dimension_semantics<parallel>], iteration_bounds = array<i64: 2>, scalar_prefetch = 0 : i64, scratch_operands = 3 : i64, tpu.core_type = #tpu.core_type<tc>, window_params = [{transform_indices = @transform_0, window_bounds = array<i64: 1, 1, 16, 16>}, {pipeline_mode = #tpu.pipeline_mode<synchronous>, transform_indices = @transform_1, window_bounds = array<i64: 320, 128>}, {pipeline_mode = #tpu.pipeline_mode<synchronous>, transform_indices = @transform_2, window_bounds = array<i64: 1568, 64>}, {pipeline_mode = #tpu.pipeline_mode<synchronous>, transform_indices = @transform_3, window_bounds = array<i64: 784, 16>}, {pipeline_mode = #tpu.pipeline_mode<synchronous>, transform_indices = @transform_4, window_bounds = array<i64: 1, 128>}, {pipeline_mode = #tpu.pipeline_mode<synchronous>, transform_indices = @transform_5, window_bounds = array<i64: 1, 64>}, {pipeline_mode = #tpu.pipeline_mode<synchronous>, transform_indices = @transform_6, window_bounds = array<i64: 1, 16>}, {transform_indices = @transform_7, window_bounds = array<i64: 1, 15, 16>}]} {
    %c0 = arith.constant 0 : index
    %c0_0 = arith.constant 0 : index
    %c0_1 = arith.constant 0 : index
    %c0_2 = arith.constant 0 : index
    %0 = vector.load %arg1[%c0, %c0_0, %c0_1, %c0_2] : memref<1x1x16x16xf32, #tpu.memory_space<vmem>>, vector<1x1x16x16xf32>
    %1 = vector.shape_cast %0 : vector<1x1x16x16xf32> to vector<16x16xf32>
    %cst = arith.constant 0.000000e+00 : f32
    %2 = vector.broadcast %cst : f32 to vector<15x320xf32>
    %c0_3 = arith.constant 0 : index
    %c0_4 = arith.constant 0 : index
    %3 = vector.load %arg9[%c0_3, %c0_4] : memref<15x320xf32, #tpu.memory_space<vmem>>, vector<15x320xf32>
    tpu.vector_store %arg9[%c0_3, %c0_4], %2 {strides = array<i32>} : memref<15x320xf32, #tpu.memory_space<vmem>>, vector<15x320xf32>,
    %4 = vector.extract_strided_slice %1 {offsets = [0, 0], sizes = [11, 16], strides = [1, 1]} : vector<16x16xf32> to vector<11x16xf32>
    %c4 = arith.constant 4 : index
    %c8 = arith.constant 8 : index
    %5 = vector.load %arg9[%c4, %c8] : memref<15x320xf32, #tpu.memory_space<vmem>>, vector<11x16xf32>
    tpu.vector_store %arg9[%c4, %c8], %4 {strides = array<i32>} : memref<15x320xf32, #tpu.memory_space<vmem>>, vector<11x16xf32>,
    %6 = vector.extract_strided_slice %1 {offsets = [0, 0], sizes = [12, 16], strides = [1, 1]} : vector<16x16xf32> to vector<12x16xf32>
    %c3 = arith.constant 3 : index
    %c40 = arith.constant 40 : index
    %7 = vector.load %arg9[%c3, %c40] : memref<15x320xf32, #tpu.memory_space<vmem>>, vector<12x16xf32>
    tpu.vector_store %arg9[%c3, %c40], %6 {strides = array<i32>} : memref<15x320xf32, #tpu.memory_space<vmem>>, vector<12x16xf32>,
    %8 = vector.extract_strided_slice %1 {offsets = [0, 0], sizes = [13, 16], strides = [1, 1]} : vector<16x16xf32> to vector<13x16xf32>
    %c2 = arith.constant 2 : index
    %c72 = arith.constant 72 : index
    %9 = vector.load %arg9[%c2, %c72] : memref<15x320xf32, #tpu.memory_space<vmem>>, vector<13x16xf32>
    tpu.vector_store %arg9[%c2, %c72], %8 {strides = array<i32>} : memref<15x320xf32, #tpu.memory_space<vmem>>, vector<13x16xf32>,
    %10 = vector.extract_strided_slice %1 {offsets = [0, 0], sizes = [14, 16], strides = [1, 1]} : vector<16x16xf32> to vector<14x16xf32>
    %c1 = arith.constant 1 : index
    %c104 = arith.constant 104 : index
    %11 = vector.load %arg9[%c1, %c104] : memref<15x320xf32, #tpu.memory_space<vmem>>, vector<14x16xf32>
    tpu.vector_store %arg9[%c1, %c104], %10 {strides = array<i32>} : memref<15x320xf32, #tpu.memory_space<vmem>>, vector<14x16xf32>,
    %12 = vector.extract_strided_slice %1 {offsets = [0, 0], sizes = [15, 16], strides = [1, 1]} : vector<16x16xf32> to vector<15x16xf32>
    %c0_5 = arith.constant 0 : index
    %c136 = arith.constant 136 : index
    %13 = vector.load %arg9[%c0_5, %c136] : memref<15x320xf32, #tpu.memory_space<vmem>>, vector<15x16xf32>
    tpu.vector_store %arg9[%c0_5, %c136], %12 {strides = array<i32>} : memref<15x320xf32, #tpu.memory_space<vmem>>, vector<15x16xf32>,
    %14 = vector.extract_strided_slice %1 {offsets = [1, 0], sizes = [15, 16], strides = [1, 1]} : vector<16x16xf32> to vector<15x16xf32>
    %c0_6 = arith.constant 0 : index
    %c168 = arith.constant 168 : index
    %15 = vector.load %arg9[%c0_6, %c168] : memref<15x320xf32, #tpu.memory_space<vmem>>, vector<15x16xf32>
    tpu.vector_store %arg9[%c0_6, %c168], %14 {strides = array<i32>} : memref<15x320xf32, #tpu.memory_space<vmem>>, vector<15x16xf32>,
    %16 = vector.extract_strided_slice %1 {offsets = [2, 0], sizes = [14, 16], strides = [1, 1]} : vector<16x16xf32> to vector<14x16xf32>
    %c0_7 = arith.constant 0 : index
    %c200 = arith.constant 200 : index
    %17 = vector.load %arg9[%c0_7, %c200] : memref<15x320xf32, #tpu.memory_space<vmem>>, vector<14x16xf32>
    tpu.vector_store %arg9[%c0_7, %c200], %16 {strides = array<i32>} : memref<15x320xf32, #tpu.memory_space<vmem>>, vector<14x16xf32>,
    %18 = vector.extract_strided_slice %1 {offsets = [3, 0], sizes = [13, 16], strides = [1, 1]} : vector<16x16xf32> to vector<13x16xf32>
    %c0_8 = arith.constant 0 : index
    %c232 = arith.constant 232 : index
    %19 = vector.load %arg9[%c0_8, %c232] : memref<15x320xf32, #tpu.memory_space<vmem>>, vector<13x16xf32>
    tpu.vector_store %arg9[%c0_8, %c232], %18 {strides = array<i32>} : memref<15x320xf32, #tpu.memory_space<vmem>>, vector<13x16xf32>,
    %20 = vector.extract_strided_slice %1 {offsets = [4, 0], sizes = [12, 16], strides = [1, 1]} : vector<16x16xf32> to vector<12x16xf32>
    %c0_9 = arith.constant 0 : index
    %c264 = arith.constant 264 : index
    %21 = vector.load %arg9[%c0_9, %c264] : memref<15x320xf32, #tpu.memory_space<vmem>>, vector<12x16xf32>
    tpu.vector_store %arg9[%c0_9, %c264], %20 {strides = array<i32>} : memref<15x320xf32, #tpu.memory_space<vmem>>, vector<12x16xf32>,
    %22 = vector.extract_strided_slice %1 {offsets = [5, 0], sizes = [11, 16], strides = [1, 1]} : vector<16x16xf32> to vector<11x16xf32>
    %c0_10 = arith.constant 0 : index
    %c296 = arith.constant 296 : index
    %23 = vector.load %arg9[%c0_10, %c296] : memref<15x320xf32, #tpu.memory_space<vmem>>, vector<11x16xf32>
    tpu.vector_store %arg9[%c0_10, %c296], %22 {strides = array<i32>} : memref<15x320xf32, #tpu.memory_space<vmem>>, vector<11x16xf32>,
    %c0_11 = arith.constant 0 : index
    %c0_12 = arith.constant 0 : index
    %24 = vector.load %arg9[%c0_11, %c0_12] : memref<15x320xf32, #tpu.memory_space<vmem>>, vector<15x320xf32>
    %c0_13 = arith.constant 0 : index
    %c0_14 = arith.constant 0 : index
    %25 = vector.load %arg2[%c0_13, %c0_14] : memref<320x128xf32, #tpu.memory_space<vmem>>, vector<320x128xf32>
    %cst_15 = arith.constant dense<0.000000e+00> : vector<15x128xf32>
    %26 = tpu.matmul %24, %25, %cst_15 {dimension_numbers = #tpu.dot_dimension_numbers<[1], [0], [0], [1], [0, 0, 1, 1], [], []>} : vector<15x320xf32>, vector<320x128xf32>, vector<15x128xf32> -> vector<15x128xf32>
    %c0_16 = arith.constant 0 : index
    %c0_17 = arith.constant 0 : index
    %27 = vector.load %arg5[%c0_16, %c0_17] : memref<1x128xf32, #tpu.memory_space<vmem>>, vector<1x128xf32>
    %28 = vector.broadcast %27 : vector<1x128xf32> to vector<15x128xf32>
    %29 = arith.addf %26, %28 : vector<15x128xf32>
    %cst_18 = arith.constant 0.000000e+00 : f32
    %30 = vector.broadcast %cst_18 : f32 to vector<15x128xf32>
    %31 = arith.maximumf %29, %30 : vector<15x128xf32>
    %cst_19 = arith.constant 0.000000e+00 : f32
    %32 = vector.broadcast %cst_19 : f32 to vector<15x1568xf32>
    %c0_20 = arith.constant 0 : index
    %c0_21 = arith.constant 0 : index
    %33 = vector.load %arg10[%c0_20, %c0_21] : memref<15x1568xf32, #tpu.memory_space<vmem>>, vector<15x1568xf32>
    tpu.vector_store %arg10[%c0_20, %c0_21], %32 {strides = array<i32>} : memref<15x1568xf32, #tpu.memory_space<vmem>>, vector<15x1568xf32>,
    %34 = vector.extract_strided_slice %31 {offsets = [0, 0], sizes = [12, 128], strides = [1, 1]} : vector<15x128xf32> to vector<12x128xf32>
    %c3_22 = arith.constant 3 : index
    %c48 = arith.constant 48 : index
    %35 = vector.load %arg10[%c3_22, %c48] : memref<15x1568xf32, #tpu.memory_space<vmem>>, vector<12x128xf32>
    tpu.vector_store %arg10[%c3_22, %c48], %34 {strides = array<i32>} : memref<15x1568xf32, #tpu.memory_space<vmem>>, vector<12x128xf32>,
    %36 = vector.extract_strided_slice %31 {offsets = [0, 0], sizes = [13, 128], strides = [1, 1]} : vector<15x128xf32> to vector<13x128xf32>
    %c2_23 = arith.constant 2 : index
    %c272 = arith.constant 272 : index
    %37 = vector.load %arg10[%c2_23, %c272] : memref<15x1568xf32, #tpu.memory_space<vmem>>, vector<13x128xf32>
    tpu.vector_store %arg10[%c2_23, %c272], %36 {strides = array<i32>} : memref<15x1568xf32, #tpu.memory_space<vmem>>, vector<13x128xf32>,
    %38 = vector.extract_strided_slice %31 {offsets = [0, 0], sizes = [14, 128], strides = [1, 1]} : vector<15x128xf32> to vector<14x128xf32>
    %c1_24 = arith.constant 1 : index
    %c496 = arith.constant 496 : index
    %39 = vector.load %arg10[%c1_24, %c496] : memref<15x1568xf32, #tpu.memory_space<vmem>>, vector<14x128xf32>
    tpu.vector_store %arg10[%c1_24, %c496], %38 {strides = array<i32>} : memref<15x1568xf32, #tpu.memory_space<vmem>>, vector<14x128xf32>,
    %c0_25 = arith.constant 0 : index
    %c720 = arith.constant 720 : index
    %40 = vector.load %arg10[%c0_25, %c720] : memref<15x1568xf32, #tpu.memory_space<vmem>>, vector<15x128xf32>
    tpu.vector_store %arg10[%c0_25, %c720], %31 {strides = array<i32>} : memref<15x1568xf32, #tpu.memory_space<vmem>>, vector<15x128xf32>,
    %41 = vector.extract_strided_slice %31 {offsets = [1, 0], sizes = [14, 128], strides = [1, 1]} : vector<15x128xf32> to vector<14x128xf32>
    %c0_26 = arith.constant 0 : index
    %c944 = arith.constant 944 : index
    %42 = vector.load %arg10[%c0_26, %c944] : memref<15x1568xf32, #tpu.memory_space<vmem>>, vector<14x128xf32>
    tpu.vector_store %arg10[%c0_26, %c944], %41 {strides = array<i32>} : memref<15x1568xf32, #tpu.memory_space<vmem>>, vector<14x128xf32>,
    %43 = vector.extract_strided_slice %31 {offsets = [2, 0], sizes = [13, 128], strides = [1, 1]} : vector<15x128xf32> to vector<13x128xf32>
    %c0_27 = arith.constant 0 : index
    %c1168 = arith.constant 1168 : index
    %44 = vector.load %arg10[%c0_27, %c1168] : memref<15x1568xf32, #tpu.memory_space<vmem>>, vector<13x128xf32>
    tpu.vector_store %arg10[%c0_27, %c1168], %43 {strides = array<i32>} : memref<15x1568xf32, #tpu.memory_space<vmem>>, vector<13x128xf32>,
    %45 = vector.extract_strided_slice %31 {offsets = [3, 0], sizes = [12, 128], strides = [1, 1]} : vector<15x128xf32> to vector<12x128xf32>
    %c0_28 = arith.constant 0 : index
    %c1392 = arith.constant 1392 : index
    %46 = vector.load %arg10[%c0_28, %c1392] : memref<15x1568xf32, #tpu.memory_space<vmem>>, vector<12x128xf32>
    tpu.vector_store %arg10[%c0_28, %c1392], %45 {strides = array<i32>} : memref<15x1568xf32, #tpu.memory_space<vmem>>, vector<12x128xf32>,
    %c0_29 = arith.constant 0 : index
    %c0_30 = arith.constant 0 : index
    %47 = vector.load %arg10[%c0_29, %c0_30] : memref<15x1568xf32, #tpu.memory_space<vmem>>, vector<15x1568xf32>
    %c0_31 = arith.constant 0 : index
    %c0_32 = arith.constant 0 : index
    %48 = vector.load %arg3[%c0_31, %c0_32] : memref<1568x64xf32, #tpu.memory_space<vmem>>, vector<1568x64xf32>
    %cst_33 = arith.constant dense<0.000000e+00> : vector<15x64xf32>
    %49 = tpu.matmul %47, %48, %cst_33 {dimension_numbers = #tpu.dot_dimension_numbers<[1], [0], [0], [1], [0, 0, 1, 1], [], []>} : vector<15x1568xf32>, vector<1568x64xf32>, vector<15x64xf32> -> vector<15x64xf32>
    %c0_34 = arith.constant 0 : index
    %c0_35 = arith.constant 0 : index
    %50 = vector.load %arg6[%c0_34, %c0_35] : memref<1x64xf32, #tpu.memory_space<vmem>>, vector<1x64xf32>
    %51 = vector.broadcast %50 : vector<1x64xf32> to vector<15x64xf32>
    %52 = arith.addf %49, %51 : vector<15x64xf32>
    %cst_36 = arith.constant 0.000000e+00 : f32
    %53 = vector.broadcast %cst_36 : f32 to vector<15x64xf32>
    %54 = arith.maximumf %52, %53 : vector<15x64xf32>
    %cst_37 = arith.constant 0.000000e+00 : f32
    %55 = vector.broadcast %cst_37 : f32 to vector<15x784xf32>
    %c0_38 = arith.constant 0 : index
    %c0_39 = arith.constant 0 : index
    %56 = vector.load %arg11[%c0_38, %c0_39] : memref<15x784xf32, #tpu.memory_space<vmem>>, vector<15x784xf32>
    tpu.vector_store %arg11[%c0_38, %c0_39], %55 {strides = array<i32>} : memref<15x784xf32, #tpu.memory_space<vmem>>, vector<15x784xf32>,
    %57 = vector.extract_strided_slice %54 {offsets = [0, 0], sizes = [12, 64], strides = [1, 1]} : vector<15x64xf32> to vector<12x64xf32>
    %c3_40 = arith.constant 3 : index
    %c24 = arith.constant 24 : index
    %58 = vector.load %arg11[%c3_40, %c24] : memref<15x784xf32, #tpu.memory_space<vmem>>, vector<12x64xf32>
    tpu.vector_store %arg11[%c3_40, %c24], %57 {strides = array<i32>} : memref<15x784xf32, #tpu.memory_space<vmem>>, vector<12x64xf32>,
    %59 = vector.extract_strided_slice %54 {offsets = [0, 0], sizes = [13, 64], strides = [1, 1]} : vector<15x64xf32> to vector<13x64xf32>
    %c2_41 = arith.constant 2 : index
    %c136_42 = arith.constant 136 : index
    %60 = vector.load %arg11[%c2_41, %c136_42] : memref<15x784xf32, #tpu.memory_space<vmem>>, vector<13x64xf32>
    tpu.vector_store %arg11[%c2_41, %c136_42], %59 {strides = array<i32>} : memref<15x784xf32, #tpu.memory_space<vmem>>, vector<13x64xf32>,
    %61 = vector.extract_strided_slice %54 {offsets = [0, 0], sizes = [14, 64], strides = [1, 1]} : vector<15x64xf32> to vector<14x64xf32>
    %c1_43 = arith.constant 1 : index
    %c248 = arith.constant 248 : index
    %62 = vector.load %arg11[%c1_43, %c248] : memref<15x784xf32, #tpu.memory_space<vmem>>, vector<14x64xf32>
    tpu.vector_store %arg11[%c1_43, %c248], %61 {strides = array<i32>} : memref<15x784xf32, #tpu.memory_space<vmem>>, vector<14x64xf32>,
    %c0_44 = arith.constant 0 : index
    %c360 = arith.constant 360 : index
    %63 = vector.load %arg11[%c0_44, %c360] : memref<15x784xf32, #tpu.memory_space<vmem>>, vector<15x64xf32>
    tpu.vector_store %arg11[%c0_44, %c360], %54 {strides = array<i32>} : memref<15x784xf32, #tpu.memory_space<vmem>>, vector<15x64xf32>,
    %64 = vector.extract_strided_slice %54 {offsets = [1, 0], sizes = [14, 64], strides = [1, 1]} : vector<15x64xf32> to vector<14x64xf32>
    %c0_45 = arith.constant 0 : index
    %c472 = arith.constant 472 : index
    %65 = vector.load %arg11[%c0_45, %c472] : memref<15x784xf32, #tpu.memory_space<vmem>>, vector<14x64xf32>
    tpu.vector_store %arg11[%c0_45, %c472], %64 {strides = array<i32>} : memref<15x784xf32, #tpu.memory_space<vmem>>, vector<14x64xf32>,
    %66 = vector.extract_strided_slice %54 {offsets = [2, 0], sizes = [13, 64], strides = [1, 1]} : vector<15x64xf32> to vector<13x64xf32>
    %c0_46 = arith.constant 0 : index
    %c584 = arith.constant 584 : index
    %67 = vector.load %arg11[%c0_46, %c584] : memref<15x784xf32, #tpu.memory_space<vmem>>, vector<13x64xf32>
    tpu.vector_store %arg11[%c0_46, %c584], %66 {strides = array<i32>} : memref<15x784xf32, #tpu.memory_space<vmem>>, vector<13x64xf32>,
    %68 = vector.extract_strided_slice %54 {offsets = [3, 0], sizes = [12, 64], strides = [1, 1]} : vector<15x64xf32> to vector<12x64xf32>
    %c0_47 = arith.constant 0 : index
    %c696 = arith.constant 696 : index
    %69 = vector.load %arg11[%c0_47, %c696] : memref<15x784xf32, #tpu.memory_space<vmem>>, vector<12x64xf32>
    tpu.vector_store %arg11[%c0_47, %c696], %68 {strides = array<i32>} : memref<15x784xf32, #tpu.memory_space<vmem>>, vector<12x64xf32>,
    %c0_48 = arith.constant 0 : index
    %c0_49 = arith.constant 0 : index
    %70 = vector.load %arg11[%c0_48, %c0_49] : memref<15x784xf32, #tpu.memory_space<vmem>>, vector<15x784xf32>
    %c0_50 = arith.constant 0 : index
    %c0_51 = arith.constant 0 : index
    %71 = vector.load %arg4[%c0_50, %c0_51] : memref<784x16xf32, #tpu.memory_space<vmem>>, vector<784x16xf32>
    %cst_52 = arith.constant dense<0.000000e+00> : vector<15x16xf32>
    %72 = tpu.matmul %70, %71, %cst_52 {dimension_numbers = #tpu.dot_dimension_numbers<[1], [0], [0], [1], [0, 0, 1, 1], [], []>} : vector<15x784xf32>, vector<784x16xf32>, vector<15x16xf32> -> vector<15x16xf32>
    %c0_53 = arith.constant 0 : index
    %c0_54 = arith.constant 0 : index
    %73 = vector.load %arg7[%c0_53, %c0_54] : memref<1x16xf32, #tpu.memory_space<vmem>>, vector<1x16xf32>
    %74 = vector.broadcast %73 : vector<1x16xf32> to vector<15x16xf32>
    %75 = arith.addf %72, %74 : vector<15x16xf32>
    %c0_55 = arith.constant 0 : index
    %c0_56 = arith.constant 0 : index
    %c0_57 = arith.constant 0 : index
    %76 = vector.load %arg8[%c0_55, %c0_56, %c0_57] : memref<1x15x16xf32, #tpu.memory_space<vmem>>, vector<1x15x16xf32>
    %77 = vector.shape_cast %76 : vector<1x15x16xf32> to vector<15x16xf32>
    %78 = vector.shape_cast %75 : vector<15x16xf32> to vector<1x15x16xf32>
    tpu.vector_store %arg8[%c0_55, %c0_56, %c0_57], %78 {strides = array<i32>} : memref<1x15x16xf32, #tpu.memory_space<vmem>>, vector<1x15x16xf32>,
    return
  }
  func.func @transform_0(%arg0: i32) -> (i32, i32, i32, i32) {
    %c0_i32 = arith.constant 0 : i32
    %c0_i32_0 = arith.constant 0 : i32
    %c0_i32_1 = arith.constant 0 : i32
    %c0_i32_2 = arith.constant 0 : i32
    return %arg0, %c0_i32, %c0_i32_0, %c0_i32_1 : i32, i32, i32, i32
  }
  func.func @transform_1(%arg0: i32) -> (i32, i32) {
    %c0_i32 = arith.constant 0 : i32
    %c0_i32_0 = arith.constant 0 : i32
    %c0_i32_1 = arith.constant 0 : i32
    return %c0_i32, %c0_i32_0 : i32, i32
  }
  func.func @transform_2(%arg0: i32) -> (i32, i32) {
    %c0_i32 = arith.constant 0 : i32
    %c0_i32_0 = arith.constant 0 : i32
    %c0_i32_1 = arith.constant 0 : i32
    return %c0_i32, %c0_i32_0 : i32, i32
  }
  func.func @transform_3(%arg0: i32) -> (i32, i32) {
    %c0_i32 = arith.constant 0 : i32
    %c0_i32_0 = arith.constant 0 : i32
    %c0_i32_1 = arith.constant 0 : i32
    return %c0_i32, %c0_i32_0 : i32, i32
  }
  func.func @transform_4(%arg0: i32) -> (i32, i32) {
    %c0_i32 = arith.constant 0 : i32
    %c0_i32_0 = arith.constant 0 : i32
    %c0_i32_1 = arith.constant 0 : i32
    return %c0_i32, %c0_i32_0 : i32, i32
  }
  func.func @transform_5(%arg0: i32) -> (i32, i32) {
    %c0_i32 = arith.constant 0 : i32
    %c0_i32_0 = arith.constant 0 : i32
    %c0_i32_1 = arith.constant 0 : i32
    return %c0_i32, %c0_i32_0 : i32, i32
  }
  func.func @transform_6(%arg0: i32) -> (i32, i32) {
    %c0_i32 = arith.constant 0 : i32
    %c0_i32_0 = arith.constant 0 : i32
    %c0_i32_1 = arith.constant 0 : i32
    return %c0_i32, %c0_i32_0 : i32, i32
  }
  func.func @transform_7(%arg0: i32) -> (i32, i32, i32) {
    %c0_i32 = arith.constant 0 : i32
    %c0_i32_0 = arith.constant 0 : i32
    %c0_i32_1 = arith.constant 0 : i32
    return %arg0, %c0_i32, %c0_i32_0 : i32, i32, i32
  }
}

</mosaic_0001>

<bundles_post_ra>
// kernel: tile.18
= control target key start
LH: loop header
LB: loop body
LE: loop exit
PB: predicated region body
PF: predicated region fallthrough
CT: control target
= control target key end

     0   :  { %s28_s0 = inlined_call_operand.vmem [shape: f32[8], index: 0, kind: input, shape index: {}]   ;;  %s29_s1 = inlined_call_operand.vmem [shape: f32[16,8], index: 1, kind: output, shape index: {}]  }
   0x1   :  { %v4_v0 = vld [vmem:[%s28_s0] ss:$0 sm:$0xff] }
   0x2   :  { %5 = vst [vmem:[%s29_s1] sm:$0xff] %v4_v0  ;;  %8 = vst [vmem:[%s29_s1 + $0x8] sm:$0xff] %v4_v0 }

// kernel: tile.19
= control target key start
LH: loop header
LB: loop body
LE: loop exit
PB: predicated region body
PF: predicated region fallthrough
CT: control target
= control target key end

     0   :  { %s131_s10 = smov 120   ;;  %s132_s11 = smov 104   ;;  %vm3_vm0 = vcmask 64512   ;;  %vm9_vm1 = vcmask 1048512   ;;  %vm15_vm2 = vcmask 982912   ;;  %vm21_vm3 = vcmask 917312   ;;  %s207_s0 = inlined_call_operand.vmem [shape: f32[16,8], index: 0, kind: input, shape index: {}]   ;;  %s208_s1 = inlined_call_operand.vmem [shape: f32[1,128], index: 1, kind: output, shape index: {}]  }
   0x1   :  { %v101_v0 = vld [vmem:[%s207_s0 + $0xf] sm:$0x1]   ;;  %v103_v1 = vld [vmem:[%s207_s0 + $0xd] sm:$0x1]   ;;  %v102_v2 = vld [vmem:[%s207_s0 + $0xe] sm:$0x1]  }
   0x2   :  { %7 = vrot.lane.b32.xlu0 %v101_v0, %s131_s10  ;;  %19 = vrot.lane.b32.xlu1 %v103_v1, %s132_s11  ;;  %v104_v3 = vld [vmem:[%s207_s0 + $0xc] sm:$0x1]   ;;  %s133_s16 = smov 112   ;;  %s134_s17 = smov 96   ;;  %v105_v4 = vld [vmem:[%s207_s0 + $0xb] sm:$0x1]  }
   0x3   :  { %v106_v5 = vld [vmem:[%s207_s0 + $0xa] sm:$0x1]   ;;  %v2_v6 = vld [vmem:[%s207_s0] sm:$0x1]   ;;  %s135_s24 = smov 88   ;;  %s136_s25 = smov 80  }
   0x4   :  { %4 = vst.msk [vmem:[#allocation0] sm:$0x1] %vm3_vm0, %v2_v6   ;;  %v107_v7 = vld [vmem:[%s207_s0 + $0x9] sm:$0x1]   ;;  %v108_v8 = vld [vmem:[%s207_s0 + $0x8] sm:$0x1]  }
   0x5   :  { %s137_s30 = smov 72   ;;  %s138_s2 = smov 64   ;;  %v109_v9 = vld [vmem:[%s207_s0 + $0x7] sm:$0x1]   ;;  %v110_v10 = vld [vmem:[%s207_s0 + $0x6] sm:$0x1]  }
   0x6   :  { %13 = vrot.lane.b32.xlu0 %v102_v2, %s133_s16  ;;  %25 = vrot.lane.b32.xlu1 %v104_v3, %s134_s17  ;;  %s139_s7 = smov 56   ;;  %s140_s8 = smov 48   ;;  %v111_v11 = vld [vmem:[%s207_s0 + $0x5] sm:$0x1]   ;;  %v112_v12 = vld [vmem:[%s207_s0 + $0x4] sm:$0x1]  }
   0x7   :  { %s141_s13 = smov 40   ;;  %s142_s14 = smov 32   ;;  %v113_v13 = vld [vmem:[%s207_s0 + $0x3] sm:$0x1]   ;;  %v114_v14 = vld [vmem:[%s207_s0 + $0x2] sm:$0x1]  }
   0x8   :  { %s143_s19 = smov 24   ;;  %s144_s20 = smov 16   ;;  %v115_v15 = vld [vmem:[%s207_s0 + $0x1] sm:$0x1]   ;;  %vm27_vm4 = vcmask 851712   ;;  %vm33_vm5 = vcmask 786112  }
   0x9   :  { %s145_s0 = smov 8   ;;  %vm39_vm6 = vcmask 720512   ;;  %vm45_vm7 = vcmask 654912   ;;  %vm51_vm8 = vcmask 589312   ;;  %vm57_vm9 = vcmask 523712  }
   0xa   :  { %31 = vrot.lane.b32.xlu0 %v105_v4, %s135_s24  ;;  %37 = vrot.lane.b32.xlu1 %v106_v5, %s136_s25  ;;  %vm63_vm10 = vcmask 458112   ;;  %vm69_vm11 = vcmask 392512   ;;  %vm75_vm12 = vcmask 326912   ;;  %vm81_vm13 = vcmask 261312  }
   0xb   :  { %vm87_vm14 = vcmask 195712   ;;  %vm93_vm15 = vcmask 130112  }
   0xe   :  { %43 = vrot.lane.b32.xlu0 %v107_v7, %s137_s30  ;;  %49 = vrot.lane.b32.xlu1 %v108_v8, %s138_s2 }
  0x12   :  { %55 = vrot.lane.b32.xlu0 %v109_v9, %s139_s7  ;;  %61 = vrot.lane.b32.xlu1 %v110_v10, %s140_s8 }
  0x16   :  { %67 = vrot.lane.b32.xlu0 %v111_v11, %s141_s13  ;;  %73 = vrot.lane.b32.xlu1 %v112_v12, %s142_s14 }
  0x1a   :  { %79 = vrot.lane.b32.xlu0 %v113_v13, %s143_s19  ;;  %85 = vrot.lane.b32.xlu1 %v114_v14, %s144_s20 }
  0x1e   :  { %91 = vrot.lane.b32.xlu0 %v115_v15, %s145_s0 }
  0x74   :  { %v8_v16 = vpop.permute.xlu0 %7   ;;  %v20_v17 = vpop.permute.xlu1 %19  }
  0x75   :  { %10 = vst.msk [vmem:[#allocation0] sm:$0x1] %vm9_vm1, %v8_v16  }
  0x78   :  { %v14_v18 = vpop.permute.xlu0 %13   ;;  %v26_v19 = vpop.permute.xlu1 %25  }
  0x79   :  { %16 = vst.msk [vmem:[#allocation0] sm:$0x1] %vm15_vm2, %v14_v18  }
  0x7a   :  { %22 = vst.msk [vmem:[#allocation0] sm:$0x1] %vm21_vm3, %v20_v17  }
  0x7b   :  { %28 = vst.msk [vmem:[#allocation0] sm:$0x1] %vm27_vm4, %v26_v19  }
  0x7c   :  { %v32_v20 = vpop.permute.xlu0 %31   ;;  %v38_v21 = vpop.permute.xlu1 %37  }
  0x7d   :  { %34 = vst.msk [vmem:[#allocation0] sm:$0x1] %vm33_vm5, %v32_v20  }
  0x7e   :  { %40 = vst.msk [vmem:[#allocation0] sm:$0x1] %vm39_vm6, %v38_v21  }
  0x80   :  { %v44_v22 = vpop.permute.xlu0 %43   ;;  %v50_v23 = vpop.permute.xlu1 %49  }
  0x81   :  { %46 = vst.msk [vmem:[#allocation0] sm:$0x1] %vm45_vm7, %v44_v22  }
  0x82   :  { %52 = vst.msk [vmem:[#allocation0] sm:$0x1] %vm51_vm8, %v50_v23  }
  0x84   :  { %v56_v24 = vpop.permute.xlu0 %55   ;;  %v62_v25 = vpop.permute.xlu1 %61  }
  0x85   :  { %58 = vst.msk [vmem:[#allocation0] sm:$0x1] %vm57_vm9, %v56_v24  }
  0x86   :  { %64 = vst.msk [vmem:[#allocation0] sm:$0x1] %vm63_vm10, %v62_v25  }
  0x88   :  { %v68_v26 = vpop.permute.xlu0 %67   ;;  %v74_v27 = vpop.permute.xlu1 %73  }
  0x89   :  { %70 = vst.msk [vmem:[#allocation0] sm:$0x1] %vm69_vm11, %v68_v26  }
  0x8a   :  { %76 = vst.msk [vmem:[#allocation0] sm:$0x1] %vm75_vm12, %v74_v27  }
  0x8c   :  { %v80_v28 = vpop.permute.xlu0 %79   ;;  %v86_v29 = vpop.permute.xlu1 %85  }
  0x8d   :  { %82 = vst.msk [vmem:[#allocation0] sm:$0x1] %vm81_vm13, %v80_v28  }
  0x8e   :  { %88 = vst.msk [vmem:[#allocation0] sm:$0x1] %vm87_vm14, %v86_v29  }
  0x90   :  { %v92_v30 = vpop.permute.xlu0 %91  }
  0x91   :  { %94 = vst.msk [vmem:[#allocation0] sm:$0x1] %vm93_vm15, %v92_v30  }
  0x98   :  { %v98_v31 = vld [vmem:[#allocation0] sm:$0x1] }
  0x99   :  { %100 = vst [vmem:[%s208_s1] sm:$0x1] %v98_v31 }

// kernel: tile.23
= control target key start
LH: loop header
LB: loop body
LE: loop exit
PB: predicated region body
PF: predicated region fallthrough
CT: control target
= control target key end

     0   :  { %s28_s0 = inlined_call_operand.vmem [shape: f32[4], index: 0, kind: input, shape index: {}]   ;;  %s29_s1 = inlined_call_operand.vmem [shape: f32[16,4], index: 1, kind: output, shape index: {}]  }
   0x1   :  { %v4_v0 = vld [vmem:[%s28_s0] ss:$0 sm:$0xff] }
   0x2   :  { %5 = vst [vmem:[%s29_s1] sm:$0xff] %v4_v0  ;;  %8 = vst [vmem:[%s29_s1 + $0x8] sm:$0xff] %v4_v0 }

// kernel: tile.24
= control target key start
LH: loop header
LB: loop body
LE: loop exit
PB: predicated region body
PF: predicated region fallthrough
CT: control target
= control target key end

     0   :  { %s131_s10 = smov 60   ;;  %s132_s11 = smov 52   ;;  %vm3_vm0 = vcmask 31744   ;;  %vm9_vm1 = vcmask 523744   ;;  %vm15_vm2 = vcmask 490944   ;;  %vm21_vm3 = vcmask 458144   ;;  %s207_s0 = inlined_call_operand.vmem [shape: f32[16,4], index: 0, kind: input, shape index: {}]   ;;  %s208_s1 = inlined_call_operand.vmem [shape: f32[1,64], index: 1, kind: output, shape index: {}]  }
   0x1   :  { %v101_v0 = vld [vmem:[%s207_s0 + $0xf] sm:$0x1]   ;;  %v103_v1 = vld [vmem:[%s207_s0 + $0xd] sm:$0x1]   ;;  %v102_v2 = vld [vmem:[%s207_s0 + $0xe] sm:$0x1]  }
   0x2   :  { %7 = vrot.lane.b32.xlu0 %v101_v0, %s131_s10  ;;  %19 = vrot.lane.b32.xlu1 %v103_v1, %s132_s11  ;;  %v104_v3 = vld [vmem:[%s207_s0 + $0xc] sm:$0x1]   ;;  %s133_s16 = smov 56   ;;  %s134_s17 = smov 48   ;;  %v105_v4 = vld [vmem:[%s207_s0 + $0xb] sm:$0x1]  }
   0x3   :  { %v106_v5 = vld [vmem:[%s207_s0 + $0xa] sm:$0x1]   ;;  %v2_v6 = vld [vmem:[%s207_s0] sm:$0x1]   ;;  %s135_s24 = smov 44   ;;  %s136_s25 = smov 40  }
   0x4   :  { %4 = vst.msk [vmem:[#allocation0] sm:$0x1] %vm3_vm0, %v2_v6   ;;  %v107_v7 = vld [vmem:[%s207_s0 + $0x9] sm:$0x1]   ;;  %v108_v8 = vld [vmem:[%s207_s0 + $0x8] sm:$0x1]  }
   0x5   :  { %s137_s30 = smov 36   ;;  %s138_s2 = smov 32   ;;  %v109_v9 = vld [vmem:[%s207_s0 + $0x7] sm:$0x1]   ;;  %v110_v10 = vld [vmem:[%s207_s0 + $0x6] sm:$0x1]  }
   0x6   :  { %13 = vrot.lane.b32.xlu0 %v102_v2, %s133_s16  ;;  %25 = vrot.lane.b32.xlu1 %v104_v3, %s134_s17  ;;  %s139_s7 = smov 28   ;;  %s140_s8 = smov 24   ;;  %v111_v11 = vld [vmem:[%s207_s0 + $0x5] sm:$0x1]   ;;  %v112_v12 = vld [vmem:[%s207_s0 + $0x4] sm:$0x1]  }
   0x7   :  { %s141_s13 = smov 20   ;;  %s142_s14 = smov 16   ;;  %v113_v13 = vld [vmem:[%s207_s0 + $0x3] sm:$0x1]   ;;  %v114_v14 = vld [vmem:[%s207_s0 + $0x2] sm:$0x1]  }
   0x8   :  { %s143_s19 = smov 12   ;;  %s144_s20 = smov 8   ;;  %v115_v15 = vld [vmem:[%s207_s0 + $0x1] sm:$0x1]   ;;  %vm27_vm4 = vcmask 425344   ;;  %vm33_vm5 = vcmask 392544  }
   0x9   :  { %s145_s0 = smov 4   ;;  %vm39_vm6 = vcmask 359744   ;;  %vm45_vm7 = vcmask 326944   ;;  %vm51_vm8 = vcmask 294144   ;;  %vm57_vm9 = vcmask 261344  }
   0xa   :  { %31 = vrot.lane.b32.xlu0 %v105_v4, %s135_s24  ;;  %37 = vrot.lane.b32.xlu1 %v106_v5, %s136_s25  ;;  %vm63_vm10 = vcmask 228544   ;;  %vm69_vm11 = vcmask 195744   ;;  %vm75_vm12 = vcmask 162944   ;;  %vm81_vm13 = vcmask 130144  }
   0xb   :  { %vm87_vm14 = vcmask 97344   ;;  %vm93_vm15 = vcmask 64544  }
   0xe   :  { %43 = vrot.lane.b32.xlu0 %v107_v7, %s137_s30  ;;  %49 = vrot.lane.b32.xlu1 %v108_v8, %s138_s2 }
  0x12   :  { %55 = vrot.lane.b32.xlu0 %v109_v9, %s139_s7  ;;  %61 = vrot.lane.b32.xlu1 %v110_v10, %s140_s8 }
  0x16   :  { %67 = vrot.lane.b32.xlu0 %v111_v11, %s141_s13  ;;  %73 = vrot.lane.b32.xlu1 %v112_v12, %s142_s14 }
  0x1a   :  { %79 = vrot.lane.b32.xlu0 %v113_v13, %s143_s19  ;;  %85 = vrot.lane.b32.xlu1 %v114_v14, %s144_s20 }
  0x1e   :  { %91 = vrot.lane.b32.xlu0 %v115_v15, %s145_s0 }
  0x74   :  { %v8_v16 = vpop.permute.xlu0 %7   ;;  %v20_v17 = vpop.permute.xlu1 %19  }
  0x75   :  { %10 = vst.msk [vmem:[#allocation0] sm:$0x1] %vm9_vm1, %v8_v16  }
  0x78   :  { %v14_v18 = vpop.permute.xlu0 %13   ;;  %v26_v19 = vpop.permute.xlu1 %25  }
  0x79   :  { %16 = vst.msk [vmem:[#allocation0] sm:$0x1] %vm15_vm2, %v14_v18  }
  0x7a   :  { %22 = vst.msk [vmem:[#allocation0] sm:$0x1] %vm21_vm3, %v20_v17  }
  0x7b   :  { %28 = vst.msk [vmem:[#allocation0] sm:$0x1] %vm27_vm4, %v26_v19  }
  0x7c   :  { %v32_v20 = vpop.permute.xlu0 %31   ;;  %v38_v21 = vpop.permute.xlu1 %37  }
  0x7d   :  { %34 = vst.msk [vmem:[#allocation0] sm:$0x1] %vm33_vm5, %v32_v20  }
  0x7e   :  { %40 = vst.msk [vmem:[#allocation0] sm:$0x1] %vm39_vm6, %v38_v21  }
  0x80   :  { %v44_v22 = vpop.permute.xlu0 %43   ;;  %v50_v23 = vpop.permute.xlu1 %49  }
  0x81   :  { %46 = vst.msk [vmem:[#allocation0] sm:$0x1] %vm45_vm7, %v44_v22  }
  0x82   :  { %52 = vst.msk [vmem:[#allocation0] sm:$0x1] %vm51_vm8, %v50_v23  }
  0x84   :  { %v56_v24 = vpop.permute.xlu0 %55   ;;  %v62_v25 = vpop.permute.xlu1 %61  }
  0x85   :  { %58 = vst.msk [vmem:[#allocation0] sm:$0x1] %vm57_vm9, %v56_v24  }
  0x86   :  { %64 = vst.msk [vmem:[#allocation0] sm:$0x1] %vm63_vm10, %v62_v25  }
  0x88   :  { %v68_v26 = vpop.permute.xlu0 %67   ;;  %v74_v27 = vpop.permute.xlu1 %73  }
  0x89   :  { %70 = vst.msk [vmem:[#allocation0] sm:$0x1] %vm69_vm11, %v68_v26  }
  0x8a   :  { %76 = vst.msk [vmem:[#allocation0] sm:$0x1] %vm75_vm12, %v74_v27  }
  0x8c   :  { %v80_v28 = vpop.permute.xlu0 %79   ;;  %v86_v29 = vpop.permute.xlu1 %85  }
  0x8d   :  { %82 = vst.msk [vmem:[#allocation0] sm:$0x1] %vm81_vm13, %v80_v28  }
  0x8e   :  { %88 = vst.msk [vmem:[#allocation0] sm:$0x1] %vm87_vm14, %v86_v29  }
  0x90   :  { %v92_v30 = vpop.permute.xlu0 %91  }
  0x91   :  { %94 = vst.msk [vmem:[#allocation0] sm:$0x1] %vm93_vm15, %v92_v30  }
  0x98   :  { %v98_v31 = vld [vmem:[#allocation0] sm:$0x1] }
  0x99   :  { %100 = vst [vmem:[%s208_s1] sm:$0x1] %v98_v31 }

// kernel: model_forward.1
= control target key start
LH: loop header
LB: loop body
LE: loop exit
PB: predicated region body
PF: predicated region fallthrough
CT: control target
= control target key end

     0   :  { %s3019_s24 = smov 0   ;;  %s4248_s0 = inlined_call_operand.vmem [shape: f32[2,1,16,16], index: 0, kind: input, shape index: {}]   ;;  %s4249_s1 = inlined_call_operand.vmem [shape: f32[320,128], index: 1, kind: input, shape index: {}]   ;;  %s4250_s2 = inlined_call_operand.vmem [shape: f32[1568,64], index: 2, kind: input, shape index: {}]   ;;  %s4251_s3 = inlined_call_operand.vmem [shape: f32[784,16], index: 3, kind: input, shape index: {}]   ;;  %s4252_s4 = inlined_call_operand.vmem [shape: f32[1,128], index: 4, kind: input, shape index: {}]   ;;  %s4253_s5 = inlined_call_operand.vmem [shape: f32[1,64], index: 5, kind: input, shape index: {}]   ;;  %s4254_s6 = inlined_call_operand.vmem [shape: f32[1,16], index: 6, kind: input, shape index: {}]   ;;  %s4255_s7 = inlined_call_operand.vmem [shape: f32[2,15,16], index: 7, kind: output, shape index: {}]  }
   0x1 LB: > { %s2130_s25 = sadd.s32 4294967295, %s2964_s24   ;;  %p2134_p0 = scmp.ge.s32.totalorder %s2964_s24, 1  ;;  %s2964_s24 = sphi %s3019_s24, %s17_s24  }
   0x2   : > { %p237_p1 = scmp.lt.s32.totalorder %s2964_s24, 3 }
   0x4   : > { %p238_p2 = pnand %p2134_p0, %p237_p1 }
   0x5   : > { %p269_p3 = scmp.lt.s32.totalorder (!%p238_p2), %s2130_s25, 1  ;;  %v431_v0 = vld [vmem:[%s4249_s1 + $0x80] sm:$0xff] (!%p238_p2)  ;;  %v432_v1 = vld [vmem:[%s4249_s1 + $0x88] sm:$0xff] (!%p238_p2)  ;;  %v433_v6 = vld [vmem:[%s4249_s1 + $0x90] sm:$0xff] (!%p238_p2)  ;;  %v2966_v9 = vmov (!%p238_p2), 0.0   ;;  %s2967_s29 = smov (!%p238_p2), 8  }
   0x6   : > { %241 = sbr.rel (%p238_p2) target bundleno = 1184 (0x4a0), region = 48  ;;  %v415_v2 = vld [vmem:[%s4249_s1] sm:$0xff] (!%p238_p2)  ;;  %v416_v3 = vld [vmem:[%s4249_s1 + $0x8] sm:$0xff] (!%p238_p2)  ;;  %v2589_v4 = vpack.c.bf16 (!%p238_p2), %v432_v1, %v431_v0  ;;  %v434_v7 = vld [vmem:[%s4249_s1 + $0x98] sm:$0xff] (!%p238_p2)  ;;  %282 = vst [vmem:[#allocation2 + $0x8] sm:$0xff] (!%p238_p2), %v2966_v9  ;;  %s2968_s11 = smov (!%p238_p2), 40  }
   0x7   : > { %v2591_v5 = vpack.c.bf16 (!%p238_p2), %v416_v3, %v415_v2  ;;  %v3050_v8 = vld [vmem:[%s4249_s1 + $0x10] sm:$0xff] (!%p238_p2)  ;;  %281 = vst [vmem:[#allocation2] sm:$0xff] (!%p238_p2), %v2966_v9  ;;  %285 = vst [vmem:[#allocation2 + $0x18] sm:$0x7f] (!%p238_p2), %v2966_v9  ;;  %v2593_v10 = vpack.c.bf16 (!%p238_p2), %v434_v7, %v433_v6  ;;  %v418_v11 = vld [vmem:[%s4249_s1 + $0x18] sm:$0xff] (!%p238_p2)  ;;  %vm369_vm0 = vcmask (!%p238_p2), 1045504  }
   0x8   : > { %286 = vst [vmem:[#allocation2 + $0x20] sm:$0x7f] (!%p238_p2), %v2966_v9  ;;  %620 = vst [vmem:[#allocation3] sm:$0xff] (!%p238_p2), %v2966_v9  ;;  %v435_v12 = vld [vmem:[%s4249_s1 + $0xa0] sm:$0xff] (!%p238_p2)  ;;  %v436_v13 = vld [vmem:[%s4249_s1 + $0xa8] sm:$0xff] (!%p238_p2)  ;;  %2590 = vmatprep.subr.bf16.mxu0 (!%p238_p2), %v2589_v4  ;;  %v2595_v16 = vpack.c.bf16 (!%p238_p2), %v418_v11, %v3050_v8  ;;  %vm356_vm1 = vcmask (!%p238_p2), 1046528  }
   0x9   : > { %621 = vst [vmem:[#allocation3 + $0x8] sm:$0xff] (!%p238_p2), %v2966_v9  ;;  %622 = vst [vmem:[#allocation3 + $0x10] sm:$0xff] (!%p238_p2), %v2966_v9  ;;  %2592 = vmatpush3.bf16.msra.mxu0 (!%p238_p2), %v2591_v5  ;;  %v2597_v19 = vpack.c.bf16 (!%p238_p2), %v436_v13, %v435_v12  ;;  %v419_v20 = vld [vmem:[%s4249_s1 + $0x20] sm:$0xff] (!%p238_p2)  ;;  %v420_v21 = vld [vmem:[%s4249_s1 + $0x28] sm:$0xff] (!%p238_p2)  ;;  %vm283_vm2 = vcmask (!%p238_p2), 523264   ;;  %s2969_s9 = smov (!%p238_p2), 72  }
   0xa   : > { %623 = vst [vmem:[#allocation3 + $0x18] sm:$0xff] (!%p238_p2), %v2966_v9  ;;  %624 = vst [vmem:[#allocation3 + $0x20] sm:$0xff] (!%p238_p2), %v2966_v9  ;;  %2594 = vmatprep.subr.bf16.mxu0 (!%p238_p2), %v2593_v10  ;;  %v437_v25 = vld [vmem:[%s4249_s1 + $0xb0] sm:$0xff] (!%p238_p2)  ;;  %v438_v26 = vld [vmem:[%s4249_s1 + $0xb8] sm:$0xff] (!%p238_p2)  ;;  %v2599_v29 = vpack.c.bf16 (!%p238_p2), %v420_v21, %v419_v20  ;;  %vm4256_vm3 = vcmask (!%p238_p2), 1044480   ;;  %vm287_vm4 = vcmask (!%p238_p2), 522240  }
   0xb   : > { %625 = vst [vmem:[#allocation3 + $0x28] sm:$0xff] (!%p238_p2), %v2966_v9  ;;  %626 = vst [vmem:[#allocation3 + $0x30] sm:$0xff] (!%p238_p2), %v2966_v9  ;;  %v421_v30 = vld [vmem:[%s4249_s1 + $0x30] sm:$0xff] (!%p238_p2)  ;;  %v422_v31 = vld [vmem:[%s4249_s1 + $0x38] sm:$0xff] (!%p238_p2)  ;;  %v2601_v36 = vpack.c.bf16 (!%p238_p2), %v438_v26, %v437_v25  ;;  %vm291_vm5 = vcmask (!%p238_p2), 1043456   ;;  %s2970_s12 = smov (!%p238_p2), 104  }
   0xc   : > { %627 = vst [vmem:[#allocation3 + $0x38] sm:$0xff] (!%p238_p2), %v2966_v9  ;;  %628 = vst [vmem:[#allocation3 + $0x40] sm:$0xff] (!%p238_p2), %v2966_v9  ;;  %v439_v32 = vld [vmem:[%s4249_s1 + $0xc0] sm:$0xff] (!%p238_p2)  ;;  %v440_v37 = vld [vmem:[%s4249_s1 + $0xc8] sm:$0xff] (!%p238_p2)  ;;  %v2603_v41 = vpack.c.bf16 (!%p238_p2), %v422_v31, %v421_v30  ;;  %vm305_vm6 = vcmask (!%p238_p2), 1042432   ;;  %vm319_vm7 = vcmask (!%p238_p2), 1041408  }
   0xd   : > { %s4260_s25 = smov (!%p269_p3, %s2130_s25), 1  ;;  %629 = vst [vmem:[#allocation3 + $0x48] sm:$0xff] %v2966_v9  ;;  %630 = vst [vmem:[#allocation3 + $0x50] sm:$0xff] %v2966_v9  ;;  %2596 = vmatpush3.bf16.msra.mxu0 %v2595_v16  ;;  %v447_v38 = vld [vmem:[%s4249_s1 + $0x100] sm:$0xff]  ;;  %v448_v39 = vld [vmem:[%s4249_s1 + $0x108] sm:$0xff]  ;;  %v2605_v46 = vpack.c.bf16 %v440_v37, %v439_v32  ;;  %vm333_vm8 = vcmask 1040384  }
   0xe   : > { %631 = vst [vmem:[#allocation3 + $0x58] sm:$0xff] %v2966_v9  ;;  %634 = vst [vmem:[#allocation3 + $0x68] sm:$0x7f] %v2966_v9  ;;  %s2150_s17 = sshll.u32 %s4260_s25, 4  ;;  %2598 = vmatprep.subr.bf16.mxu0 %v2597_v19  ;;  %v423_v42 = vld [vmem:[%s4249_s1 + $0x40] sm:$0xff]  ;;  %v2621_v43 = vpack.c.bf16 %v448_v39, %v447_v38  ;;  %v449_v44 = vld [vmem:[%s4249_s1 + $0x110] sm:$0xff] }
   0xf   : > { %635 = vst [vmem:[#allocation3 + $0x70] sm:$0x7f] %v2966_v9  ;;  %636 = vst [vmem:[#allocation3 + $0x78] sm:$0x7f] %v2966_v9  ;;  %s273_s28 = scalar_lea.vmem %s4248_s0, %s2150_s17  ;;  %v450_v45 = vld [vmem:[%s4249_s1 + $0x118] sm:$0xff]  ;;  %v424_v47 = vld [vmem:[%s4249_s1 + $0x48] sm:$0xff]  ;;  %s278_s16 = scalar_lea.vmem %s4255_s7, %s2150_s17 }
  0x10   : > { %637 = vst [vmem:[#allocation3 + $0x80] sm:$0x7f] %v2966_v9  ;;  %638 = vst [vmem:[#allocation3 + $0x88] sm:$0x7f] %v2966_v9  ;;  %v3107_v14 = vld [vmem:[%s273_s28] sm:$0xff]  ;;  %v3109_v15 = vld [vmem:[%s273_s28 + $0x8] sm:$0xff]  ;;  %v2625_v48 = vpack.c.bf16 %v450_v45, %v449_v44  ;;  %2622 = vmatprep.subr.bf16.mxu1 %v2621_v43  ;;  %v2607_v57 = vpack.c.bf16 %v424_v47, %v423_v42 }
  0x11   : > { %639 = vst [vmem:[#allocation3 + $0x90] sm:$0x7f] %v2966_v9  ;;  %640 = vst [vmem:[#allocation3 + $0x98] sm:$0x7f] %v2966_v9  ;;  %347 = vrot.lane.b32.xlu0 %v3107_v14, %s2967_s29  ;;  %v306_v17 = vrot.slane %v3107_v14, 5  ;;  %v292_v18 = vrot.slane %v3107_v14, 4  ;;  %2600 = vmatpush3.bf16.msra.mxu0 %v2599_v29 }
  0x12   : > { %641 = vst [vmem:[#allocation3 + $0xa0] sm:$0x7f] %v2966_v9  ;;  %642 = vst [vmem:[#allocation3 + $0xa8] sm:$0x7f] %v2966_v9  ;;  %v370_v22 = vrot.slane %v3107_v14, 2  ;;  %v371_v23 = vrot.slane %v3109_v15, 2  ;;  %2602 = vmatprep.subr.bf16.mxu0 %v2601_v36  ;;  %2624 = vmatpush3.bf16.msra.mxu1 %v2621_v43 }
  0x13   : > { %643 = vst [vmem:[#allocation3 + $0xb0] sm:$0x7f] %v2966_v9  ;;  %644 = vst [vmem:[#allocation3 + $0xb8] sm:$0x7f] %v2966_v9  ;;  %309 = vrot.lane.b32.xlu1 %v306_v17, %s2968_s11  ;;  %v320_v24 = vrot.slane %v3107_v14, 6  ;;  %v357_v27 = vrot.slane %v3107_v14, 1  ;;  %2626 = vmatprep.subr.bf16.mxu1 %v2625_v48 }
  0x14   : > { %645 = vst [vmem:[#allocation3 + $0xc0] sm:$0x7f] %v2966_v9  ;;  %1528 = vst [vmem:[#allocation4] sm:$0xff] %v2966_v9  ;;  %v358_v28 = vrot.slane %v3109_v15, 1  ;;  %v372_v33 = vsel %vm369_vm0, %v370_v22, %v371_v23  ;;  %v384_v34 = vrot.slane %v3107_v14, 3  ;;  %v385_v35 = vrot.slane %v3109_v15, 3 }
  0x15   : > { %1529 = vst [vmem:[#allocation4 + $0x8] sm:$0xff] %v2966_v9  ;;  %1530 = vst [vmem:[#allocation4 + $0x10] sm:$0xff] %v2966_v9  ;;  %295 = vrot.lane.b32.xlu0 %v292_v18, %s2967_s29  ;;  %v451_v49 = vld [vmem:[%s4249_s1 + $0x120] sm:$0xff]  ;;  %v452_v50 = vld [vmem:[%s4249_s1 + $0x128] sm:$0xff]  ;;  %v293_v52 = vrot.slane %v3109_v15, 4  ;;  %v334_v55 = vrot.slane %v3107_v14, 7  ;;  %2604 = vmatpush3.bf16.msra.mxu0 %v2603_v41 }
  0x16   : > { %1531 = vst [vmem:[#allocation4 + $0x18] sm:$0xff] %v2966_v9  ;;  %1532 = vst [vmem:[#allocation4 + $0x20] sm:$0xff] %v2966_v9  ;;  %v359_v40 = vsel %vm356_vm1, %v357_v27, %v358_v28  ;;  %v386_v51 = vsel %vm4256_vm3, %v384_v34, %v385_v35  ;;  %v441_v53 = vld [vmem:[%s4249_s1 + $0xd0] sm:$0xff]  ;;  %v442_v54 = vld [vmem:[%s4249_s1 + $0xd8] sm:$0xff]  ;;  %v307_v56 = vrot.slane %v3109_v15, 5  ;;  %v2629_v59 = vpack.c.bf16 %v452_v50, %v451_v49  ;;  %s2971_s21 = smov 112  }
  0x17   : > { %1533 = vst [vmem:[#allocation4 + $0x28] sm:$0xff] %v2966_v9  ;;  %1535 = vst [vmem:[#allocation4 + $0x38] sm:$0x7f] %v2966_v9  ;;  %323 = vrot.lane.b32.xlu1 %v320_v24, %s2969_s9  ;;  %v425_v58 = vld [vmem:[%s4249_s1 + $0x50] sm:$0xff]  ;;  %2606 = vmatprep.subr.bf16.mxu0 %v2605_v46  ;;  %v2609_v60 = vpack.c.bf16 %v442_v54, %v441_v53  ;;  %v426_v61 = vld [vmem:[%s4249_s1 + $0x58] sm:$0xff]  ;;  %v294_v0 = vsel %vm291_vm5, %v292_v18, %v293_v52  ;;  %v321_v18 = vrot.slane %v3109_v15, 6 }
  0x18   : > { %1536 = vst [vmem:[#allocation4 + $0x40] sm:$0x7f] %v2966_v9  ;;  %1537 = vst [vmem:[#allocation4 + $0x48] sm:$0x7f] %v2966_v9  ;;  %v453_v62 = vld [vmem:[%s4249_s1 + $0x130] sm:$0xff]  ;;  %v454_v63 = vld [vmem:[%s4249_s1 + $0x138] sm:$0xff]  ;;  %2628 = vmatpush3.bf16.msra.mxu1 %v2625_v48  ;;  %v308_v3 = vsel %vm305_vm6, %v306_v17, %v307_v56  ;;  %v2611_v4 = vpack.c.bf16 %v426_v61, %v425_v58 }
  0x19   : > { %1538 = vst [vmem:[#allocation4 + $0x50] sm:$0x7f] %v2966_v9  ;;  %1539 = vst [vmem:[#allocation4 + $0x58] sm:$0x7f] %v2966_v9  ;;  %373 = vrot.lane.b32.xlu0 %v372_v33, %s2969_s9  ;;  %v443_v1 = vld [vmem:[%s4249_s1 + $0xe0] sm:$0xff]  ;;  %v444_v2 = vld [vmem:[%s4249_s1 + $0xe8] sm:$0xff]  ;;  %2608 = vmatpush3.bf16.msra.mxu0 %v2607_v57  ;;  %v2633_v5 = vpack.c.bf16 %v454_v63, %v453_v62  ;;  %v322_v20 = vsel %vm319_vm7, %v320_v24, %v321_v18 }
  0x1a   : > { %1540 = vst [vmem:[#allocation4 + $0x60] sm:$0x7f] %v2966_v9  ;;  %284 = vst.msk [vmem:[#allocation2 + $0x10] sm:$0xff] %vm283_vm2, %v2966_v9  ;;  %2630 = vmatprep.subr.bf16.mxu1 %v2629_v59  ;;  %2610 = vmatprep.subr.bf16.mxu0 %v2609_v60  ;;  %v2613_v6 = vpack.c.bf16 %v444_v2, %v443_v1  ;;  %v427_v7 = vld [vmem:[%s4249_s1 + $0x60] sm:$0xff]  ;;  %v428_v8 = vld [vmem:[%s4249_s1 + $0x68] sm:$0xff]  ;;  %v335_v21 = vrot.slane %v3109_v15, 7 }
  0x1b   : > { %288 = vst.msk [vmem:[#allocation2 + $0x28] sm:$0x7f] %vm287_vm4, %v2966_v9  ;;  %360 = vrot.lane.b32.xlu1 %v359_v40, %s2968_s11  ;;  %v445_v10 = vld [vmem:[%s4249_s1 + $0xf0] sm:$0xff]  ;;  %v446_v11 = vld [vmem:[%s4249_s1 + $0xf8] sm:$0xff]  ;;  %v2615_v12 = vpack.c.bf16 %v428_v8, %v427_v7  ;;  %vm353_vm9 = vcmask 195648   ;;  %vm301_vm10 = vcmask 195652  }
  0x1c   : > { %2632 = vmatpush3.bf16.msra.mxu1 %v2629_v59  ;;  %v2617_v13 = vpack.c.bf16 %v446_v11, %v445_v10  ;;  %v429_v16 = vld [vmem:[%s4249_s1 + $0x70] sm:$0xff]  ;;  %v430_v17 = vld [vmem:[%s4249_s1 + $0x78] sm:$0xff]  ;;  %v336_v22 = vsel %vm333_vm8, %v334_v55, %v335_v21  ;;  %vm315_vm11 = vcmask 458051   ;;  %vm329_vm12 = vcmask 720450   ;;  %v840_v45 = vld [vmem:[%s4250_s2 + $0x180] sm:$0xff]  ;;  %s2972_s22 = smov 16  }
  0x1d   : > { %387 = vrot.lane.b32.xlu0 %v386_v51, %s2970_s12  ;;  %2612 = vmatpush3.bf16.msra.mxu0 %v2611_v4  ;;  %v2619_v19 = vpack.c.bf16 %v430_v17, %v429_v16  ;;  %vm366_vm13 = vcmask 458048   ;;  %vm379_vm14 = vcmask 720448   ;;  %vm393_vm15 = vcmask 982848   ;;  %v841_v46 = vld [vmem:[%s4250_s2 + $0x188] sm:$0xff]  ;;  %v824_v47 = vld [vmem:[%s4250_s2 + $0x100] sm:$0xff]  ;;  %v843_v58 = vld [vmem:[%s4250_s2 + $0x198] sm:$0xff] }
  0x1e   : > { %2634 = vmatprep.subr.bf16.mxu1 %v2633_v5  ;;  %2614 = vmatprep.subr.bf16.mxu0 %v2613_v6  ;;  %vm343_vm4 = vcmask 982849   ;;  %vm303_vm5 = vcmask 194624   ;;  %vm317_vm3 = vcmask 457024   ;;  %v2669_v48 = vpack.c.bf16 %v841_v46, %v840_v45  ;;  %v825_v49 = vld [vmem:[%s4250_s2 + $0x108] sm:$0xff]  ;;  %v808_v50 = vld [vmem:[%s4250_s2 + $0x80] sm:$0xff]  ;;  %v826_v59 = vld [vmem:[%s4250_s2 + $0x110] sm:$0xff] }
  0x1f   : > { %337 = vrot.lane.b32.xlu1 %v334_v55, %s2970_s12  ;;  %v809_v51 = vld [vmem:[%s4250_s2 + $0x88] sm:$0xff]  ;;  %v792_v54 = vld [vmem:[%s4250_s2] sm:$0xff]  ;;  %v827_v60 = vld [vmem:[%s4250_s2 + $0x118] sm:$0xff]  ;;  %s2973_s23 = smov 48   ;;  %s2974_s26 = smov 80  }
  0x20   : > { %2636 = vmatpush3.bf16.msra.mxu1 %v2633_v5  ;;  %v2637_v53 = vpack.c.bf16 %v809_v51, %v808_v50  ;;  %v793_v55 = vld [vmem:[%s4250_s2 + $0x8] sm:$0xff]  ;;  %v2675_v62 = vpack.c.bf16 %v827_v60, %v826_v59  ;;  %v810_v63 = vld [vmem:[%s4250_s2 + $0x90] sm:$0xff]  ;;  %v844_v4 = vld [vmem:[%s4250_s2 + $0x1a0] sm:$0xff]  ;;  %s2975_s27 = smov 120   ;;  %s2976_s18 = smov 24  }
  0x21   : > { %297 = vrot.lane.b32.xlu0 %v294_v0, %s2967_s29  ;;  %2616 = vmatpush3.bf16.msra.mxu0 %v2615_v12  ;;  %v2639_v57 = vpack.c.bf16 %v793_v55, %v792_v54  ;;  %v811_v0 = vld [vmem:[%s4250_s2 + $0x98] sm:$0xff]  ;;  %v794_v1 = vld [vmem:[%s4250_s2 + $0x10] sm:$0xff]  ;;  %v845_v5 = vld [vmem:[%s4250_s2 + $0x1a8] sm:$0xff]  ;;  %s2977_s19 = smov 88   ;;  %s2978_s8 = smov 56  }
  0x22   : > { %2618 = vmatprep.subr.bf16.mxu0 %v2617_v13  ;;  %2638 = vmatprep.subr.bf16.mxu1 %v2637_v53  ;;  %v2641_v2 = vpack.c.bf16 %v811_v0, %v810_v63  ;;  %v2677_v7 = vpack.c.bf16 %v845_v5, %v844_v4  ;;  %v828_v8 = vld [vmem:[%s4250_s2 + $0x120] sm:$0xff]  ;;  %v829_v10 = vld [vmem:[%s4250_s2 + $0x128] sm:$0xff]  ;;  %v830_v21 = vld [vmem:[%s4250_s2 + $0x130] sm:$0xff] }
  0x23   : > { %311 = vrot.lane.b32.xlu1 %v308_v3, %s2968_s11  ;;  %v795_v3 = vld [vmem:[%s4250_s2 + $0x18] sm:$0xff]  ;;  %v812_v11 = vld [vmem:[%s4250_s2 + $0xa0] sm:$0xff]  ;;  %v813_v12 = vld [vmem:[%s4250_s2 + $0xa8] sm:$0xff]  ;;  %v2679_v17 = vpack.c.bf16 %v829_v10, %v828_v8 }
  0x24   : > { %v2643_v6 = vpack.c.bf16 %v795_v3, %v794_v1  ;;  %v796_v13 = vld [vmem:[%s4250_s2 + $0x20] sm:$0xff]  ;;  %v797_v16 = vld [vmem:[%s4250_s2 + $0x28] sm:$0xff]  ;;  %v2645_v18 = vpack.c.bf16 %v813_v12, %v812_v11  ;;  %v834_v45 = vld [vmem:[%s4250_s2 + $0x150] sm:$0xff] }
  0x25   : > { %397 = vrot.lane.b32.xlu0 %v293_v52, %s2967_s29  ;;  %2620 = vmatpush3.bf16.msra.mxu0 %v2619_v19  ;;  %v2671_v52 = vpack.c.bf16 %v825_v49, %v824_v47  ;;  %v846_v19 = vld [vmem:[%s4250_s2 + $0x1b0] sm:$0xff]  ;;  %v835_v46 = vld [vmem:[%s4250_s2 + $0x158] sm:$0xff]  ;;  %v836_v59 = vld [vmem:[%s4250_s2 + $0x160] sm:$0xff] }
  0x26   : > { %2670 = vmatprep.subr.bf16.mxu0 %v2669_v48  ;;  %v2691_v47 = vpack.c.bf16 %v835_v46, %v834_v45  ;;  %v818_v50 = vld [vmem:[%s4250_s2 + $0xd0] sm:$0xff]  ;;  %v819_v51 = vld [vmem:[%s4250_s2 + $0xd8] sm:$0xff]  ;;  %v837_v60 = vld [vmem:[%s4250_s2 + $0x168] sm:$0xff] }
  0x27   : > { %403 = vrot.lane.b32.xlu1 %v307_v56, %s2968_s11  ;;  %v842_v56 = vld [vmem:[%s4250_s2 + $0x190] sm:$0xff]  ;;  %v2657_v53 = vpack.c.bf16 %v819_v51, %v818_v50  ;;  %v803_v55 = vld [vmem:[%s4250_s2 + $0x58] sm:$0xff]  ;;  %v2139_v63 = vld [vmem:[%s4252_s4] ss:$0 sm:$0xff] }
  0x28   : > { %v2673_v61 = vpack.c.bf16 %v843_v58, %v842_v56  ;;  %v802_v54 = vld [vmem:[%s4250_s2 + $0x50] sm:$0xff]  ;;  %v852_v56 = vld [vmem:[%s4250_s2 + $0x1e0] sm:$0xff]  ;;  %v853_v58 = vld [vmem:[%s4250_s2 + $0x1e8] sm:$0xff] }
  0x29   : > { %349 = vrot.lane.b32.xlu0 %v3109_v15, %s2967_s29  ;;  %v820_v0 = vld [vmem:[%s4250_s2 + $0xe0] sm:$0xff]  ;;  %v821_v1 = vld [vmem:[%s4250_s2 + $0xe8] sm:$0xff]  ;;  %v854_v5 = vld [vmem:[%s4250_s2 + $0x1f0] sm:$0xff] }
  0x2a   : > { %v804_v3 = vld [vmem:[%s4250_s2 + $0x60] sm:$0xff]  ;;  %v805_v4 = vld [vmem:[%s4250_s2 + $0x68] sm:$0xff]  ;;  %v838_v8 = vld [vmem:[%s4250_s2 + $0x170] sm:$0xff] }
  0x2b   : > { %362 = vrot.lane.b32.xlu1 %v358_v28, %s2968_s11  ;;  %v839_v10 = vld [vmem:[%s4250_s2 + $0x178] sm:$0xff] }
  0x2d   : > { %375 = vrot.lane.b32.xlu0 %v371_v23, %s2969_s9 }
  0x2f   : > { %325 = vrot.lane.b32.xlu1 %v322_v20, %s2969_s9  ;;  %v847_v20 = vld [vmem:[%s4250_s2 + $0x1b8] sm:$0xff] }
  0x31   : > { %389 = vrot.lane.b32.xlu0 %v385_v35, %s2970_s12 }
  0x33   : > { %339 = vrot.lane.b32.xlu1 %v336_v22, %s2970_s12  ;;  %v2647_v22 = vpack.c.bf16 %v797_v16, %v796_v13  ;;  %v2699_v16 = vpack.c.bf16 %v839_v10, %v838_v8  ;;  %v858_v10 = vld [vmem:[%s4250_s2 + $0x210] sm:$0xff] }
  0x83   : > { %v348_v14 = vpop.permute.xlu0 %347 }
  0x84   : > { %354 = vst.msk [vmem:[#allocation2 + $0x8] sm:$0xff] %vm353_vm9, %v348_v14  ;;  %v2681_v14 = vpack.c.bf16 %v847_v20, %v846_v19  ;;  %v806_v19 = vld [vmem:[%s4250_s2 + $0x70] sm:$0xff] }
  0x85   : > { %v310_v24 = vpop.permute.xlu1 %309 }
  0x87   : > { %v296_v25 = vpop.permute.xlu0 %295 }
  0x88   : > { %302 = vst.msk [vmem:[#allocation2] sm:$0xf0] %vm301_vm10, %v296_v25  ;;  %vm401_vm10 = vcmask 191552   ;;  %v814_v25 = vld [vmem:[%s4250_s2 + $0xb0] sm:$0xff] }
  0x89   : > { %316 = vst.msk [vmem:[#allocation2] sm:$0xf8] %vm315_vm11, %v310_v24  ;;  %v324_v23 = vpop.permute.xlu1 %323  ;;  %vm407_vm11 = vcmask 452928   ;;  %v831_v24 = vld [vmem:[%s4250_s2 + $0x138] sm:$0xff] }
  0x8a   : > { %330 = vst.msk [vmem:[#allocation2] sm:$0xfc] %vm329_vm12, %v324_v23  ;;  %vm331_vm12 = vcmask 719424   ;;  %v815_v23 = vld [vmem:[%s4250_s2 + $0xb8] sm:$0xff] }
  0x8b   : > { %v374_v26 = vpop.permute.xlu0 %373 }
  0x8d   : > { %v361_v15 = vpop.permute.xlu1 %360 }
  0x8e   : > { %367 = vst.msk [vmem:[#allocation2 + $0x8] sm:$0xff] %vm366_vm13, %v361_v15  ;;  %v798_v15 = vld [vmem:[%s4250_s2 + $0x30] sm:$0xff] }
  0x8f   : > { %380 = vst.msk [vmem:[#allocation2 + $0x8] sm:$0xff] %vm379_vm14, %v374_v26  ;;  %v388_v27 = vpop.permute.xlu0 %387  ;;  %vm345_vm14 = vcmask 981824   ;;  %v2649_v26 = vpack.c.bf16 %v815_v23, %v814_v25  ;;  %v904_v25 = vld [vmem:[%s4250_s2 + $0x380] sm:$0xff]  ;;  %v905_v23 = vld [vmem:[%s4250_s2 + $0x388] sm:$0xff] }
  0x90   : > { %394 = vst.msk [vmem:[#allocation2 + $0x8] sm:$0xff] %vm393_vm15, %v388_v27  ;;  %v799_v27 = vld [vmem:[%s4250_s2 + $0x38] sm:$0xff]  ;;  %vm743_vm15 = vcmask 130048  }
  0x91   : > { %v338_v28 = vpop.permute.xlu1 %337  ;;  %1534 = vst.msk [vmem:[#allocation4 + $0x30] sm:$0xff] %vm743_vm15, %v2966_v9 }
  0x92   : > { %344 = vst.msk [vmem:[#allocation2] sm:$0xfe] %vm343_vm4, %v338_v28  ;;  %v848_v28 = vld [vmem:[%s4250_s2 + $0x1c0] sm:$0xff]  ;;  %vm632_vm4 = vcmask 261120  }
  0x93   : > { %v298_v29 = vpop.permute.xlu0 %297  ;;  %633 = vst.msk [vmem:[#allocation3 + $0x60] sm:$0xff] %vm632_vm4, %v2966_v9 }
  0x94   : > { %304 = vst.msk [vmem:[#allocation2 + $0x18] sm:$0x7f] %vm303_vm5, %v298_v29 }
  0x95   : > { %400 = vst.msk [vmem:[#allocation2 + $0x10] sm:$0xff] %vm353_vm9, %v298_v29  ;;  %v312_v30 = vpop.permute.xlu1 %311  ;;  %vm381_vm9 = vcmask 718400   ;;  %v849_v29 = vld [vmem:[%s4250_s2 + $0x1c8] sm:$0xff] }
  0x96   : > { %318 = vst.msk [vmem:[#allocation2 + $0x18] sm:$0x7f] %vm317_vm3, %v312_v30 }
  0x97   : > { %406 = vst.msk [vmem:[#allocation2 + $0x10] sm:$0xff] %vm366_vm13, %v312_v30  ;;  %v398_v31 = vpop.permute.xlu0 %397  ;;  %v410_v32 = vld [vmem:[#allocation2 + $0x8] sm:$0xff]  ;;  %vm395_vm13 = vcmask 979776   ;;  %v2683_v30 = vpack.c.bf16 %v831_v24, %v830_v21 }
  0x98   : > { %402 = vst.msk [vmem:[#allocation2 + $0x28] sm:$0xf] %vm401_vm10, %v398_v31  ;;  %532 = vmatprep.mubr.f32.mxu0 %v410_v32  ;;  %v816_v31 = vld [vmem:[%s4250_s2 + $0xc0] sm:$0xff]  ;;  %v817_v32 = vld [vmem:[%s4250_s2 + $0xc8] sm:$0xff]  ;;  %vm695_vm10 = vcmask 916481  }
  0x99   : > { %v404_v33 = vpop.permute.xlu1 %403  ;;  %v409_v34 = vld [vmem:[#allocation2] sm:$0xff] }
  0x9a   : > { %408 = vst.msk [vmem:[#allocation2 + $0x28] sm:$0x7] %vm407_vm11, %v404_v33  ;;  %533 = vmatmul.mubr.f32.vlgmr.msra.gmra.mrb[0].mxu0 %v409_v34  ;;  %v2651_v33 = vpack.c.bf16 %v799_v27, %v798_v15  ;;  %v2685_v34 = vpack.c.bf16 %v849_v29, %v848_v28  ;;  %v872_v27 = vld [vmem:[%s4250_s2 + $0x280] sm:$0xff]  ;;  %v873_v28 = vld [vmem:[%s4250_s2 + $0x288] sm:$0xff]  ;;  %vm676_vm11 = vcmask 1047682  }
  0x9b   : > { %v350_v35 = vpop.permute.xlu0 %349  ;;  %2672 = vmatpush3.bf16.msra.mxu0 %v2671_v52 }
  0x9c   : > { %355 = vst.msk [vmem:[#allocation2 + $0x20] sm:$0x7f] %vm303_vm5, %v350_v35  ;;  %2674 = vmatprep.subr.bf16.mxu0 %v2673_v61  ;;  %v832_v35 = vld [vmem:[%s4250_s2 + $0x140] sm:$0xff]  ;;  %v2693_v61 = vpack.c.bf16 %v853_v58, %v852_v56  ;;  %vm646_vm5 = vcmask 260096   ;;  %v906_v58 = vld [vmem:[%s4250_s2 + $0x390] sm:$0xff] }
  0x9d   : > { %v363_v36 = vpop.permute.xlu1 %362  ;;  %647 = vst.msk [vmem:[#allocation3 + $0xc8] sm:$0x7f] %vm646_vm5, %v2966_v9  ;;  %vm699_vm5 = vcmask 915456  }
  0x9e   : > { %v411_v37 = vld [vmem:[#allocation2 + $0x10] sm:$0xff]  ;;  %368 = vst.msk [vmem:[#allocation2 + $0x20] sm:$0x7f] %vm317_vm3, %v363_v36  ;;  %v833_v36 = vld [vmem:[%s4250_s2 + $0x148] sm:$0xff]  ;;  %vm4257_vm3 = vcmask 1044480  }
  0x9f   : > { %2568 = vmatprep.mubr.msk.f32.mxu1 %vm283_vm2, %v411_v37  ;;  %v376_v38 = vpop.permute.xlu0 %375  ;;  %2676 = vmatpush3.bf16.msra.mxu0 %v2675_v62  ;;  %v800_v37 = vld [vmem:[%s4250_s2 + $0x40] sm:$0xff]  ;;  %v2695_v62 = vpack.c.bf16 %v837_v60, %v836_v59  ;;  %v907_v59 = vld [vmem:[%s4250_s2 + $0x398] sm:$0xff] }
  0xa0   : > { %382 = vst.msk [vmem:[#allocation2 + $0x20] sm:$0x3f] %vm381_vm9, %v376_v38  ;;  %2678 = vmatprep.subr.bf16.mxu0 %v2677_v7  ;;  %v2653_v38 = vpack.c.bf16 %v817_v32, %v816_v31  ;;  %v855_v7 = vld [vmem:[%s4250_s2 + $0x1f8] sm:$0xff]  ;;  %v2701_v31 = vpack.c.bf16 %v873_v28, %v872_v27  ;;  %vm678_vm9 = vcmask 130050   ;;  %v856_v60 = vld [vmem:[%s4250_s2 + $0x200] sm:$0xff]  ;;  %v861_v27 = vld [vmem:[%s4250_s2 + $0x228] sm:$0xff] }
  0xa1   : > { %v326_v39 = vpop.permute.xlu1 %325  ;;  %v414_v40 = vld [vmem:[#allocation2 + $0x28] sm:$0x7f]  ;;  %v2697_v13 = vpack.c.bf16 %v855_v7, %v854_v5  ;;  %v894_v28 = vld [vmem:[%s4250_s2 + $0x330] sm:$0xff] }
  0xa2   : > { %332 = vst.msk [vmem:[#allocation2 + $0x18] sm:$0x7f] %vm331_vm12, %v326_v39  ;;  %2569 = vmatmul.mubr.msk.f32.vlgmr.msra.gmra.mrb[0].mxu1 %vm283_vm2, %v414_v40  ;;  %v801_v39 = vld [vmem:[%s4250_s2 + $0x48] sm:$0xff]  ;;  %v850_v40 = vld [vmem:[%s4250_s2 + $0x1d0] sm:$0xff]  ;;  %vm682_vm2 = vcmask 129024   ;;  %vm693_vm12 = vcmask 1048449  }
  0xa3   : > { %v390_v41 = vpop.permute.xlu0 %389  ;;  %2640 = vmatpush3.bf16.msra.mxu1 %v2639_v57  ;;  %2680 = vmatpush3.bf16.msra.mxu0 %v2679_v17  ;;  %v2659_v57 = vpack.c.bf16 %v803_v55, %v802_v54  ;;  %v822_v17 = vld [vmem:[%s4250_s2 + $0xf0] sm:$0xff]  ;;  %1541 = vst.msk [vmem:[#allocation4 + $0x68] sm:$0x7f] %vm682_vm2, %v2966_v9  ;;  %v889_v9 = vld [vmem:[%s4250_s2 + $0x308] sm:$0xff] }
  0xa4   : > { %396 = vst.msk [vmem:[#allocation2 + $0x20] sm:$0x1f] %vm395_vm13, %v390_v41  ;;  %2642 = vmatprep.subr.bf16.mxu1 %v2641_v2  ;;  %2682 = vmatprep.subr.bf16.mxu0 %v2681_v14  ;;  %v851_v41 = vld [vmem:[%s4250_s2 + $0x1d8] sm:$0xff]  ;;  %v2661_v2 = vpack.c.bf16 %v821_v1, %v820_v0  ;;  %vm659_vm13 = vcmask 1047939   ;;  %v909_v7 = vld [vmem:[%s4250_s2 + $0x3a8] sm:$0xff] }
  0xa5   : > { %v340_v42 = vpop.permute.xlu1 %339  ;;  %v891_v0 = vld [vmem:[%s4250_s2 + $0x318] sm:$0xff] }
  0xa6   : > { %346 = vst.msk [vmem:[#allocation2 + $0x18] sm:$0x7f] %vm345_vm14, %v340_v42  ;;  %v2687_v42 = vpack.c.bf16 %v833_v36, %v832_v35  ;;  %vm661_vm14 = vcmask 392195  }
  0xa7   : > { %2644 = vmatpush3.bf16.msra.mxu1 %v2643_v6  ;;  %2684 = vmatpush3.bf16.msra.mxu0 %v2683_v30  ;;  %v2663_v6 = vpack.c.bf16 %v805_v4, %v804_v3  ;;  %v874_v3 = vld [vmem:[%s4250_s2 + $0x290] sm:$0xff]  ;;  %v875_v4 = vld [vmem:[%s4250_s2 + $0x298] sm:$0xff] }
  0xa8   : > { %2646 = vmatprep.subr.bf16.mxu1 %v2645_v18  ;;  %2686 = vmatprep.subr.bf16.mxu0 %v2685_v34  ;;  %v823_v18 = vld [vmem:[%s4250_s2 + $0xf8] sm:$0xff] }
  0xa9   : > { %v2665_v21 = vpack.c.bf16 %v823_v18, %v822_v17  ;;  %v2705_v17 = vpack.c.bf16 %v875_v4, %v874_v3  ;;  %v892_v18 = vld [vmem:[%s4250_s2 + $0x320] sm:$0xff]  ;;  %v867_v3 = vld [vmem:[%s4250_s2 + $0x258] sm:$0xff] }
  0xaa   : > { %v900_v4 = vld [vmem:[%s4250_s2 + $0x360] sm:$0xff] }
  0xab   : > { %v413_v43 = vld [vmem:[#allocation2 + $0x20] sm:$0x7f]  ;;  %2648 = vmatpush3.bf16.msra.mxu1 %v2647_v22  ;;  %2688 = vmatpush3.bf16.msra.mxu0 %v2687_v42  ;;  %v807_v22 = vld [vmem:[%s4250_s2 + $0x78] sm:$0xff] }
  0xac   : > { %537 = vmatprep.mubr.f32.mxu0 %v413_v43  ;;  %2650 = vmatprep.subr.bf16.mxu1 %v2649_v26  ;;  %v2655_v43 = vpack.c.bf16 %v801_v39, %v800_v37  ;;  %v2667_v24 = vpack.c.bf16 %v807_v22, %v806_v19  ;;  %v2733_v26 = vpack.c.bf16 %v905_v23, %v904_v25  ;;  %v877_v22 = vld [vmem:[%s4250_s2 + $0x2a8] sm:$0xff] }
  0xad   : > { %v412_v44 = vld [vmem:[#allocation2 + $0x18] sm:$0x7f] }
  0xae   : > { %538 = vmatmul.mubr.f32.gmra.mrb[2].mxu0 %v412_v44  ;;  %v2689_v44 = vpack.c.bf16 %v851_v41, %v850_v40 }
  0xaf   : > { %2652 = vmatpush3.bf16.msra.mxu1 %v2651_v33 }
  0xb0   : > { %2654 = vmatprep.subr.bf16.mxu1 %v2653_v38  ;;  %2690 = vmatprep.subr.bf16.mxu0 %v2689_v44 }
  0xb1   : > { %2692 = vmatpush3.bf16.msra.mxu0 %v2691_v47 }
  0xb2   : > { %2694 = vmatprep.subr.bf16.mxu0 %v2693_v61 }
  0xb3   : > { %2656 = vmatpush3.bf16.msra.mxu1 %v2655_v43 }
  0xb4   : > { %2658 = vmatprep.subr.bf16.mxu1 %v2657_v53 }
  0xb5   : > { %2696 = vmatpush3.bf16.msra.mxu0 %v2695_v62  ;;  %v857_v62 = vld [vmem:[%s4250_s2 + $0x208] sm:$0xff] }
  0xb6   : > { %2698 = vmatprep.subr.bf16.mxu0 %v2697_v13  ;;  %v2703_v8 = vpack.c.bf16 %v857_v62, %v856_v60  ;;  %v882_v60 = vld [vmem:[%s4250_s2 + $0x2d0] sm:$0xff] }
  0xb7   : > { %2660 = vmatpush3.bf16.msra.mxu1 %v2659_v57  ;;  %v888_v57 = vld [vmem:[%s4250_s2 + $0x300] sm:$0xff] }
  0xb8   : > { %2662 = vmatprep.subr.bf16.mxu1 %v2661_v2  ;;  %v2735_v61 = vpack.c.bf16 %v889_v9, %v888_v57  ;;  %v2737_v2 = vpack.c.bf16 %v907_v59, %v906_v58  ;;  %v899_v59 = vld [vmem:[%s4250_s2 + $0x358] sm:$0xff] }
  0xb9   : > { %2700 = vmatpush3.bf16.msra.mxu0 %v2699_v16 }
  0xba   : > { %2734 = vmatprep.subr.bf16.mxu0 %v2733_v26 }
  0xbb   : > { %2664 = vmatpush3.bf16.msra.mxu1 %v2663_v6  ;;  %v908_v6 = vld [vmem:[%s4250_s2 + $0x3a0] sm:$0xff] }
  0xbc   : > { %2666 = vmatprep.subr.bf16.mxu1 %v2665_v21  ;;  %v2741_v19 = vpack.c.bf16 %v909_v7, %v908_v6  ;;  %v876_v21 = vld [vmem:[%s4250_s2 + $0x2a0] sm:$0xff] }
  0xbd   : > { %v2709_v26 = vpack.c.bf16 %v877_v22, %v876_v21  ;;  %v919_v21 = vld [vmem:[%s4250_s2 + $0x3f8] sm:$0xff] }
  0xbf   : > { %2668 = vmatpush3.bf16.msra.mxu1 %v2667_v24  ;;  %v911_v24 = vld [vmem:[%s4250_s2 + $0x3b8] sm:$0xff] }
  0xc0   : > { %2702 = vmatprep.subr.bf16.mxu1 %v2701_v31 }
 0x16d   : > { %v2184_v48 = vpop.f32.mrb[0].mxu0 }
 0x16e   : > { %v2185_v49 = vpop.f32.mrb[1].mxu0 }
 0x16f   : > { %v2186_v52 = vadd.f32 %v2185_v49, %v2184_v48 }
 0x171   : > { %v535_v12 = vadd.f32 %v2186_v52, %v2139_v63 }
 0x175   : > { %v2570_v11 = vpop.f32.mrb[0].mxu1 }
 0x176   : > { %v609_v20 = vpop.f32.mrb[1].mxu1 }
 0x177   : > { %v610_v14 = vadd.f32 %v609_v20, %v535_v12  ;;  %v893_v20 = vld [vmem:[%s4250_s2 + $0x328] sm:$0xff] }
 0x178   : > { %v2743_v23 = vpack.c.bf16 %v893_v20, %v892_v18  ;;  %v918_v20 = vld [vmem:[%s4250_s2 + $0x3f0] sm:$0xff] }
 0x179   : > { %v618_v15 = vmax.f32 %v610_v14, 0.0  ;;  %v910_v14 = vld [vmem:[%s4250_s2 + $0x3b0] sm:$0xff] }
 0x17a   : > { %v2745_v31 = vpack.c.bf16 %v911_v24, %v910_v14  ;;  %v868_v14 = vld [vmem:[%s4250_s2 + $0x260] sm:$0xff] }
 0x17b   : > { %v684_v29 = vrot.slane %v618_v15, 7  ;;  %v667_v30 = vrot.slane %v618_v15, 6  ;;  %v650_v32 = vrot.slane %v618_v15, 5  ;;  %v715_v39 = vrot.slane %v618_v15, 1 }
 0x17c   : > { %v732_v44 = vrot.slane %v618_v15, 2  ;;  %v749_v46 = vrot.slane %v618_v15, 3 }
 0x17d   : > { %687 = vrot.lane.b32.xlu1 %v684_v29, %s2971_s21  ;;  %670 = vrot.lane.b32.xlu0 %v667_v30, %s2972_s22 }
 0x181   : > { %653 = vrot.lane.b32.xlu0 %v650_v32, %s2973_s23  ;;  %v2187_v33 = vpop.f32.mrb[2].mxu0 }
 0x182   : > { %v2188_v34 = vpop.f32.mrb[3].mxu0 }
 0x183   : > { %v2189_v35 = vadd.f32 %v2188_v34, %v2187_v33  ;;  %v878_v33 = vld [vmem:[%s4250_s2 + $0x2b0] sm:$0xff]  ;;  %v879_v34 = vld [vmem:[%s4250_s2 + $0x2b8] sm:$0xff] }
 0x185   : > { %v540_v36 = vadd.f32 %v2189_v35, %v2139_v63  ;;  %v890_v63 = vld [vmem:[%s4250_s2 + $0x310] sm:$0xff]  ;;  %v912_v35 = vld [vmem:[%s4250_s2 + $0x3c0] sm:$0xff] }
 0x186   : > { %v2739_v16 = vpack.c.bf16 %v891_v0, %v890_v63  ;;  %v3649_v63 = vld [vmem:[%s4250_s2 + $0x250] sm:$0xff]  ;;  %v916_v0 = vld [vmem:[%s4250_s2 + $0x3e0] sm:$0xff] }
 0x187   : > { %v615_v37 = vadd.f32 %v2570_v11, %v540_v36  ;;  %v859_v11 = vld [vmem:[%s4250_s2 + $0x218] sm:$0xff]  ;;  %v913_v36 = vld [vmem:[%s4250_s2 + $0x3c8] sm:$0xff]  ;;  %v2723_v22 = vpack.c.bf16 %v867_v3, %v3649_v63  ;;  %v940_v3 = vld [vmem:[%s4250_s2 + $0x4a0] sm:$0xff] }
 0x188   : > { %v2707_v25 = vpack.c.bf16 %v859_v11, %v858_v10  ;;  %v885_v10 = vld [vmem:[%s4250_s2 + $0x2e8] sm:$0xff] }
 0x189   : > { %v619_v38 = vmax.f32 %v615_v37, 0.0 }
 0x18b   : > { %v685_v40 = vrot.slane %v619_v38, 7  ;;  %v668_v41 = vrot.slane %v619_v38, 6  ;;  %v716_v42 = vrot.slane %v619_v38, 1  ;;  %v651_v43 = vrot.slane %v619_v38, 5 }
 0x18c   : > { %v733_v45 = vrot.slane %v619_v38, 2  ;;  %v750_v47 = vrot.slane %v619_v38, 3 }
 0x18d   : > { %v686_v48 = vsel %vm333_vm8, %v684_v29, %v685_v40  ;;  %v669_v49 = vsel %vm319_vm7, %v667_v30, %v668_v41  ;;  %v717_v50 = vsel %vm356_vm1, %v715_v39, %v716_v42  ;;  %v652_v51 = vsel %vm305_vm6, %v650_v32, %v651_v43  ;;  %v895_v32 = vld [vmem:[%s4250_s2 + $0x338] sm:$0xff]  ;;  %v862_v40 = vld [vmem:[%s4250_s2 + $0x230] sm:$0xff] }
 0x18e   : > { %689 = vrot.lane.b32.xlu0 %v686_v48, %s2971_s21  ;;  %672 = vrot.lane.b32.xlu1 %v669_v49, %s2972_s22  ;;  %v734_v52 = vsel %vm369_vm0, %v732_v44, %v733_v45  ;;  %v751_v53 = vsel %vm4257_vm3, %v749_v46, %v750_v47  ;;  %vm680_vm3 = vcmask 1046656   ;;  %v2713_v39 = vpack.c.bf16 %v879_v34, %v878_v33  ;;  %v863_v41 = vld [vmem:[%s4250_s2 + $0x238] sm:$0xff]  ;;  %v897_v46 = vld [vmem:[%s4250_s2 + $0x348] sm:$0xff] }
 0x18f   : > { %v881_v48 = vld [vmem:[%s4250_s2 + $0x2c8] sm:$0xff]  ;;  %v914_v49 = vld [vmem:[%s4250_s2 + $0x3d0] sm:$0xff]  ;;  %v968_v33 = vld [vmem:[%s4250_s2 + $0x580] sm:$0xff] }
 0x190   : > { %v969_v34 = vld [vmem:[%s4250_s2 + $0x588] sm:$0xff] }
 0x192   : > { %718 = vrot.lane.b32.xlu0 %v717_v50, %s2973_s23  ;;  %655 = vrot.lane.b32.xlu1 %v652_v51, %s2973_s23  ;;  %v915_v50 = vld [vmem:[%s4250_s2 + $0x3d8] sm:$0xff]  ;;  %v2715_v51 = vpack.c.bf16 %v863_v41, %v862_v40  ;;  %v2797_v41 = vpack.c.bf16 %v969_v34, %v968_v33  ;;  %v960_v34 = vld [vmem:[%s4250_s2 + $0x540] sm:$0xff] }
 0x193   : > { %v2753_v58 = vpack.c.bf16 %v915_v50, %v914_v49  ;;  %v920_v50 = vld [vmem:[%s4250_s2 + $0x400] sm:$0xff] }
 0x196   : > { %720 = vrot.lane.b32.xlu0 %v716_v42, %s2973_s23  ;;  %701 = vrot.lane.b32.xlu1 %v618_v15, %s2974_s26  ;;  %v860_v15 = vld [vmem:[%s4250_s2 + $0x220] sm:$0xff] }
 0x197   : > { %v2711_v37 = vpack.c.bf16 %v861_v27, %v860_v15  ;;  %v896_v42 = vld [vmem:[%s4250_s2 + $0x340] sm:$0xff]  ;;  %v903_v15 = vld [vmem:[%s4250_s2 + $0x378] sm:$0xff] }
 0x19a   : > { %735 = vrot.lane.b32.xlu0 %v734_v52, %s2972_s22  ;;  %703 = vrot.lane.b32.xlu1 %v619_v38, %s2974_s26  ;;  %v2747_v38 = vpack.c.bf16 %v895_v32, %v894_v28  ;;  %v2751_v52 = vpack.c.bf16 %v897_v46, %v896_v42  ;;  %v887_v32 = vld [vmem:[%s4250_s2 + $0x2f8] sm:$0xff]  ;;  %v952_v42 = vld [vmem:[%s4250_s2 + $0x500] sm:$0xff] }
 0x19b   : > { %v970_v46 = vld [vmem:[%s4250_s2 + $0x590] sm:$0xff] }
 0x19e   : > { %737 = vrot.lane.b32.xlu0 %v733_v45, %s2972_s22  ;;  %752 = vrot.lane.b32.xlu1 %v751_v53, %s2971_s21  ;;  %v2749_v45 = vpack.c.bf16 %v913_v36, %v912_v35 }
 0x1a2   : > { %754 = vrot.lane.b32.xlu1 %v750_v47, %s2971_s21  ;;  %v880_v47 = vld [vmem:[%s4250_s2 + $0x2c0] sm:$0xff] }
 0x1a3   : > { %v2717_v53 = vpack.c.bf16 %v881_v48, %v880_v47  ;;  %v971_v47 = vld [vmem:[%s4250_s2 + $0x598] sm:$0xff] }
 0x1ef   : > { %v688_v54 = vpop.permute.xlu1 %687  ;;  %v671_v55 = vpop.permute.xlu0 %670 }
 0x1f0   : > { %696 = vst.msk [vmem:[#allocation3 + $0x20] sm:$0xfe] %vm695_vm10, %v688_v54  ;;  %vm697_vm10 = vcmask 1047424  }
 0x1f1   : > { %677 = vst.msk [vmem:[#allocation3 + $0x10] sm:$0xfc] %vm676_vm11, %v671_v55  ;;  %vm663_vm11 = vcmask 1046912  }
 0x1f2   : > { %679 = vst.msk [vmem:[#allocation3 + $0x18] sm:$0xfc] %vm678_vm9, %v671_v55  ;;  %vm665_vm9 = vcmask 391168   ;;  %v865_v55 = vld [vmem:[%s4250_s2 + $0x248] sm:$0xff] }
 0x1f3   : > { %694 = vst.msk [vmem:[#allocation3 + $0x18] sm:$0xfe] %vm693_vm12, %v688_v54  ;;  %v654_v56 = vpop.permute.xlu0 %653  ;;  %vm724_vm12 = vcmask 1047936   ;;  %v864_v54 = vld [vmem:[%s4250_s2 + $0x240] sm:$0xff] }
 0x1f4   : > { %660 = vst.msk [vmem:[#allocation3] sm:$0xf8] %vm659_vm13, %v654_v56  ;;  %vm726_vm13 = vcmask 392192  }
 0x1f5   : > { %662 = vst.msk [vmem:[#allocation3 + $0x8] sm:$0xf8] %vm661_vm14, %v654_v56  ;;  %vm707_vm14 = vcmask 1048192   ;;  %v898_v56 = vld [vmem:[%s4250_s2 + $0x350] sm:$0xff] }
 0x1f6   : > { %v2755_v7 = vpack.c.bf16 %v899_v59, %v898_v56  ;;  %v922_v59 = vld [vmem:[%s4250_s2 + $0x410] sm:$0xff] }
 0x1f8   : > { %v768_v5 = vld [vmem:[#allocation3 + $0x10] sm:$0xff] }
 0x1fa   : > { %v769_v1 = vld [vmem:[#allocation3 + $0x18] sm:$0xff] }
 0x1fb   : > { %1140 = vmatprep.mubr.f32.mxu0 %v769_v1  ;;  %v766_v13 = vld [vmem:[#allocation3] sm:$0xff]  ;;  %v917_v1 = vld [vmem:[%s4250_s2 + $0x3e8] sm:$0xff] }
 0x1fc   : > { %1141 = vmatmul.mubr.f32.vlgmr.msra.gmra.mrb[4].mxu0 %v768_v5  ;;  %v767_v12 = vld [vmem:[#allocation3 + $0x8] sm:$0xff]  ;;  %v901_v5 = vld [vmem:[%s4250_s2 + $0x368] sm:$0xff] }
 0x1fd   : > { %2736 = vmatpush3.bf16.msra.mxu0 %v2735_v61  ;;  %1065 = vmatprep.mubr.f32.mxu1 %v767_v12  ;;  %v883_v61 = vld [vmem:[%s4250_s2 + $0x2d8] sm:$0xff]  ;;  %v2759_v24 = vpack.c.bf16 %v901_v5, %v900_v4  ;;  %v770_v4 = vld [vmem:[#allocation3 + $0x20] sm:$0xff] }
 0x1fe   : > { %2738 = vmatprep.subr.bf16.mxu0 %v2737_v2  ;;  %1066 = vmatmul.mubr.f32.vlgmr.msra.gmra.mrb[2].mxu1 %v766_v13  ;;  %v2719_v2 = vpack.c.bf16 %v865_v55, %v864_v54  ;;  %v2721_v18 = vpack.c.bf16 %v883_v61, %v882_v60  ;;  %v954_v54 = vld [vmem:[%s4250_s2 + $0x510] sm:$0xff]  ;;  %v955_v55 = vld [vmem:[%s4250_s2 + $0x518] sm:$0xff]  ;;  %v972_v61 = vld [vmem:[%s4250_s2 + $0x5a0] sm:$0xff] }
 0x1ff   : > { %2704 = vmatpush3.bf16.msra.mxu1 %v2703_v8  ;;  %v884_v8 = vld [vmem:[%s4250_s2 + $0x2e0] sm:$0xff]  ;;  %v923_v60 = vld [vmem:[%s4250_s2 + $0x418] sm:$0xff] }
 0x200   : > { %2706 = vmatprep.subr.bf16.mxu1 %v2705_v17  ;;  %v673_v29 = vpop.permute.xlu1 %672  ;;  %v690_v30 = vpop.permute.xlu0 %689 }
 0x201   : > { %2740 = vmatpush3.bf16.msra.mxu0 %v2739_v16  ;;  %681 = vst.msk [vmem:[#allocation3 + $0x78] sm:$0x7f] %vm680_vm3, %v673_v29  ;;  %vm709_vm3 = vcmask 654336  }
 0x202   : > { %2742 = vmatprep.subr.bf16.mxu0 %v2741_v19  ;;  %683 = vst.msk [vmem:[#allocation3 + $0x80] sm:$0x7f] %vm682_vm2, %v673_v29  ;;  %v2757_v19 = vpack.c.bf16 %v917_v1, %v916_v0  ;;  %v2803_v0 = vpack.c.bf16 %v955_v55, %v954_v54  ;;  %v956_v1 = vld [vmem:[%s4250_s2 + $0x520] sm:$0xff]  ;;  %v930_v54 = vld [vmem:[%s4250_s2 + $0x450] sm:$0xff]  ;;  %v931_v55 = vld [vmem:[%s4250_s2 + $0x458] sm:$0xff] }
 0x203   : > { %700 = vst.msk [vmem:[#allocation3 + $0x88] sm:$0x7f] %vm699_vm5, %v690_v30  ;;  %2708 = vmatpush3.bf16.msra.mxu1 %v2707_v25  ;;  %vm728_vm5 = vcmask 1045888   ;;  %v2725_v25 = vpack.c.bf16 %v885_v10, %v884_v8 }
 0x204   : > { %698 = vst.msk [vmem:[#allocation3 + $0x80] sm:$0x7f] %vm697_vm10, %v690_v30  ;;  %2710 = vmatprep.subr.bf16.mxu1 %v2709_v26  ;;  %v656_v43 = vpop.permute.xlu1 %655  ;;  %v719_v44 = vpop.permute.xlu0 %718  ;;  %vm730_vm10 = vcmask 390144   ;;  %v902_v26 = vld [vmem:[%s4250_s2 + $0x370] sm:$0xff]  ;;  %v2761_v30 = vpack.c.bf16 %v919_v21, %v918_v20  ;;  %v959_v21 = vld [vmem:[%s4250_s2 + $0x538] sm:$0xff] }
 0x205   : > { %2744 = vmatpush3.bf16.msra.mxu0 %v2743_v23  ;;  %664 = vst.msk [vmem:[#allocation3 + $0x68] sm:$0x7f] %vm663_vm11, %v656_v43  ;;  %vm711_vm11 = vcmask 1047168   ;;  %v869_v23 = vld [vmem:[%s4250_s2 + $0x268] sm:$0xff]  ;;  %v2763_v36 = vpack.c.bf16 %v903_v15, %v902_v26  ;;  %v958_v20 = vld [vmem:[%s4250_s2 + $0x530] sm:$0xff]  ;;  %v976_v15 = vld [vmem:[%s4250_s2 + $0x5c0] sm:$0xff] }
 0x206   : > { %2746 = vmatprep.subr.bf16.mxu0 %v2745_v31  ;;  %666 = vst.msk [vmem:[#allocation3 + $0x70] sm:$0x7f] %vm665_vm9, %v656_v43  ;;  %vm713_vm9 = vcmask 653312   ;;  %v886_v31 = vld [vmem:[%s4250_s2 + $0x2f0] sm:$0xff]  ;;  %v2727_v35 = vpack.c.bf16 %v869_v23, %v868_v14  ;;  %v953_v43 = vld [vmem:[%s4250_s2 + $0x508] sm:$0xff]  ;;  %v943_v23 = vld [vmem:[%s4250_s2 + $0x4b8] sm:$0xff] }
 0x207   : > { %725 = vst.msk [vmem:[#allocation3 + $0x38] sm:$0xff] %vm724_vm12, %v719_v44  ;;  %2712 = vmatpush3.bf16.msra.mxu1 %v2711_v37  ;;  %vm741_vm12 = vcmask 1047680   ;;  %v2729_v37 = vpack.c.bf16 %v887_v32, %v886_v31  ;;  %v2799_v49 = vpack.c.bf16 %v953_v43, %v952_v42  ;;  %v927_v31 = vld [vmem:[%s4250_s2 + $0x438] sm:$0xff]  ;;  %v928_v42 = vld [vmem:[%s4250_s2 + $0x440] sm:$0xff]  ;;  %v929_v43 = vld [vmem:[%s4250_s2 + $0x448] sm:$0xff] }
 0x208   : > { %727 = vst.msk [vmem:[#allocation3 + $0x40] sm:$0xff] %vm726_vm13, %v719_v44  ;;  %2714 = vmatprep.subr.bf16.mxu1 %v2713_v39  ;;  %v702_v57 = vpop.permute.xlu1 %701  ;;  %v721_v9 = vpop.permute.xlu0 %720  ;;  %v781_v6 = vld [vmem:[#allocation3 + $0x78] sm:$0x7f]  ;;  %vm758_vm13 = vcmask 1048448   ;;  %v871_v39 = vld [vmem:[%s4250_s2 + $0x278] sm:$0xff]  ;;  %v936_v44 = vld [vmem:[%s4250_s2 + $0x480] sm:$0xff] }
 0x209   : > { %2748 = vmatpush3.bf16.msra.mxu0 %v2747_v38  ;;  %708 = vst.msk [vmem:[#allocation3 + $0x28] sm:$0xff] %vm707_vm14, %v702_v57  ;;  %vm760_vm14 = vcmask 916480   ;;  %v870_v38 = vld [vmem:[%s4250_s2 + $0x270] sm:$0xff] }
 0x20a   : > { %2750 = vmatprep.subr.bf16.mxu0 %v2749_v45  ;;  %710 = vst.msk [vmem:[#allocation3 + $0x30] sm:$0xff] %vm709_vm3, %v702_v57  ;;  %vm745_vm3 = vcmask 1044608   ;;  %v937_v45 = vld [vmem:[%s4250_s2 + $0x488] sm:$0xff]  ;;  %v2731_v48 = vpack.c.bf16 %v871_v39, %v870_v38  ;;  %v938_v57 = vld [vmem:[%s4250_s2 + $0x490] sm:$0xff]  ;;  %v979_v39 = vld [vmem:[%s4250_s2 + $0x5d8] sm:$0xff] }
 0x20b   : > { %729 = vst.msk [vmem:[#allocation3 + $0xa0] sm:$0x3f] %vm728_vm5, %v721_v9  ;;  %v782_v62 = vld [vmem:[#allocation3 + $0x80] sm:$0x7f]  ;;  %2716 = vmatpush3.bf16.msra.mxu1 %v2715_v51  ;;  %vm747_vm5 = vcmask 126976   ;;  %v2765_v51 = vpack.c.bf16 %v937_v45, %v936_v44 }
 0x20c   : > { %731 = vst.msk [vmem:[#allocation3 + $0xa8] sm:$0x3f] %vm730_vm10, %v721_v9  ;;  %1145 = vmatprep.mubr.f32.mxu0 %v782_v62  ;;  %2718 = vmatprep.subr.bf16.mxu1 %v2717_v53  ;;  %v704_v11 = vpop.permute.xlu1 %703  ;;  %v736_v12 = vpop.permute.xlu0 %735  ;;  %v779_v17 = vld [vmem:[#allocation3 + $0x68] sm:$0x7f]  ;;  %vm762_vm10 = vcmask 1044352   ;;  %v2801_v53 = vpack.c.bf16 %v971_v47, %v970_v46  ;;  %v973_v62 = vld [vmem:[%s4250_s2 + $0x5a8] sm:$0xff] }
 0x20d   : > { %2752 = vmatpush3.bf16.msra.mxu0 %v2751_v52  ;;  %v780_v13 = vld [vmem:[#allocation3 + $0x70] sm:$0x7f]  ;;  %712 = vst.msk [vmem:[#allocation3 + $0x90] sm:$0x7f] %vm711_vm11, %v704_v11  ;;  %vm764_vm11 = vcmask 912384   ;;  %v921_v52 = vld [vmem:[%s4250_s2 + $0x408] sm:$0xff] }
 0x20e   : > { %1146 = vmatmul.mubr.f32.gmra.mrb[6].mxu0 %v781_v6  ;;  %2754 = vmatprep.subr.bf16.mxu0 %v2753_v58  ;;  %v773_v16 = vld [vmem:[#allocation3 + $0x38] sm:$0xff]  ;;  %714 = vst.msk [vmem:[#allocation3 + $0x98] sm:$0x7f] %vm713_vm9, %v704_v11  ;;  %v939_v9 = vld [vmem:[%s4250_s2 + $0x498] sm:$0xff]  ;;  %v2767_v63 = vpack.c.bf16 %v921_v52, %v920_v50  ;;  %v2805_v11 = vpack.c.bf16 %v973_v62, %v972_v61  ;;  %v978_v38 = vld [vmem:[%s4250_s2 + $0x5d0] sm:$0xff]  ;;  %vm1593_vm9 = vcmask 1048384  }
 0x20f   : > { %742 = vst.msk [vmem:[#allocation3 + $0x48] sm:$0xff] %vm741_vm12, %v736_v12  ;;  %1070 = vmatprep.mubr.f32.mxu1 %v780_v13  ;;  %1290 = vmatprep.mubr.f32.mxu0 %v773_v16  ;;  %v2769_v5 = vpack.c.bf16 %v939_v9, %v938_v57  ;;  %v941_v6 = vld [vmem:[%s4250_s2 + $0x4a8] sm:$0xff]  ;;  %v924_v13 = vld [vmem:[%s4250_s2 + $0x420] sm:$0xff]  ;;  %v2817_v45 = vpack.c.bf16 %v979_v39, %v978_v38  ;;  %v962_v46 = vld [vmem:[%s4250_s2 + $0x550] sm:$0xff]  ;;  %vm1595_vm12 = vcmask 326656  }
 0x210   : > { %744 = vst.msk [vmem:[#allocation3 + $0x50] sm:$0xff] %vm743_vm15, %v736_v12  ;;  %2720 = vmatpush3.bf16.msra.mxu1 %v2719_v2  ;;  %v753_v27 = vpop.permute.xlu1 %752  ;;  %v738_v28 = vpop.permute.xlu0 %737  ;;  %v771_v29 = vld [vmem:[#allocation3 + $0x28] sm:$0xff]  ;;  %v957_v2 = vld [vmem:[%s4250_s2 + $0x528] sm:$0xff]  ;;  %v2773_v14 = vpack.c.bf16 %v941_v6, %v940_v3  ;;  %v980_v50 = vld [vmem:[%s4250_s2 + $0x5e0] sm:$0xff]  ;;  %v2783_v52 = vpack.c.bf16 %v929_v43, %v928_v42 }
 0x211   : > { %1071 = vmatmul.mubr.f32.gmra.mrb[4].mxu1 %v779_v17  ;;  %2756 = vmatpush3.bf16.msra.mxu0 %v2755_v7  ;;  %759 = vst.msk [vmem:[#allocation3 + $0x50] sm:$0xff] %vm758_vm13, %v753_v27  ;;  %v772_v56 = vld [vmem:[#allocation3 + $0x30] sm:$0xff]  ;;  %v974_v7 = vld [vmem:[%s4250_s2 + $0x5b0] sm:$0xff]  ;;  %v975_v12 = vld [vmem:[%s4250_s2 + $0x5b8] sm:$0xff]  ;;  %vm1568_vm13 = vcmask 587840  }
 0x212   : > { %2722 = vmatprep.subr.bf16.mxu1 %v2721_v18  ;;  %2758 = vmatprep.subr.bf16.mxu0 %v2757_v19  ;;  %761 = vst.msk [vmem:[#allocation3 + $0x58] sm:$0xff] %vm760_vm14, %v753_v27  ;;  %v786_v58 = vld [vmem:[#allocation3 + $0xa0] sm:$0x7f]  ;;  %v925_v16 = vld [vmem:[%s4250_s2 + $0x428] sm:$0xff]  ;;  %v2771_v18 = vpack.c.bf16 %v923_v60, %v922_v59  ;;  %v2807_v19 = vpack.c.bf16 %v957_v2, %v956_v1  ;;  %v963_v47 = vld [vmem:[%s4250_s2 + $0x558] sm:$0xff]  ;;  %vm1599_vm14 = vcmask 325632  }
 0x213   : > { %746 = vst.msk [vmem:[#allocation3 + $0xb0] sm:$0x1f] %vm745_vm3, %v738_v28  ;;  %1215 = vmatprep.mubr.f32.mxu1 %v771_v29  ;;  %v977_v27 = vld [vmem:[%s4250_s2 + $0x5c8] sm:$0xff]  ;;  %v2811_v29 = vpack.c.bf16 %v959_v21, %v958_v20  ;;  %v964_v9 = vld [vmem:[%s4250_s2 + $0x560] sm:$0xff]  ;;  %v982_v61 = vld [vmem:[%s4250_s2 + $0x5f0] sm:$0xff]  ;;  %vm1555_vm3 = vcmask 719040  }
 0x214   : > { %748 = vst.msk [vmem:[#allocation3 + $0xb8] sm:$0x1f] %vm747_vm5, %v738_v28  ;;  %2724 = vmatpush3.bf16.msra.mxu1 %v2723_v22  ;;  %v755_v40 = vpop.permute.xlu1 %754  ;;  %v784_v8 = vld [vmem:[#allocation3 + $0x90] sm:$0x7f]  ;;  %v783_v22 = vld [vmem:[#allocation3 + $0x88] sm:$0x7f]  ;;  %v2775_v28 = vpack.c.bf16 %v925_v16, %v924_v13  ;;  %v2813_v33 = vpack.c.bf16 %v977_v27, %v976_v15 }
 0x215   : > { %2760 = vmatpush3.bf16.msra.mxu0 %v2759_v24  ;;  %2726 = vmatprep.subr.bf16.mxu1 %v2725_v25  ;;  %763 = vst.msk [vmem:[#allocation3 + $0xb8] sm:$0xf] %vm762_vm10, %v755_v40  ;;  %v785_v10 = vld [vmem:[#allocation3 + $0x98] sm:$0x7f]  ;;  %v2809_v24 = vpack.c.bf16 %v975_v12, %v974_v7  ;;  %v942_v25 = vld [vmem:[%s4250_s2 + $0x4b0] sm:$0xff]  ;;  %v948_v59 = vld [vmem:[%s4250_s2 + $0x4e0] sm:$0xff] }
 0x216   : > { %2762 = vmatprep.subr.bf16.mxu0 %v2761_v30  ;;  %765 = vst.msk [vmem:[#allocation3 + $0xc0] sm:$0xf] %vm764_vm11, %v755_v40  ;;  %v775_v26 = vld [vmem:[#allocation3 + $0x48] sm:$0xff]  ;;  %v926_v30 = vld [vmem:[%s4250_s2 + $0x430] sm:$0xff]  ;;  %v2777_v32 = vpack.c.bf16 %v943_v23, %v942_v25  ;;  %v949_v60 = vld [vmem:[%s4250_s2 + $0x4e8] sm:$0xff]  ;;  %vm1614_vm5 = vcmask 1046208  }
 0x217   : > { %v2779_v40 = vpack.c.bf16 %v927_v31, %v926_v30  ;;  %v983_v62 = vld [vmem:[%s4250_s2 + $0x5f8] sm:$0xff]  ;;  %v932_v1 = vld [vmem:[%s4250_s2 + $0x460] sm:$0xff]  ;;  %v933_v2 = vld [vmem:[%s4250_s2 + $0x468] sm:$0xff]  ;;  %v2789_v3 = vpack.c.bf16 %v949_v60, %v948_v59  ;;  %vm1583_vm10 = vcmask 1047488   ;;  %vm1585_vm11 = vcmask 456704  }
 0x218   : > { %2728 = vmatpush3.bf16.msra.mxu1 %v2727_v35  ;;  %v961_v35 = vld [vmem:[%s4250_s2 + $0x548] sm:$0xff]  ;;  %v967_v6 = vld [vmem:[%s4250_s2 + $0x578] sm:$0xff]  ;;  %v950_v7 = vld [vmem:[%s4250_s2 + $0x4f0] sm:$0xff]  ;;  %v2791_v12 = vpack.c.bf16 %v933_v2, %v932_v1 }
 0x219   : > { %2764 = vmatpush3.bf16.msra.mxu0 %v2763_v36  ;;  %2730 = vmatprep.subr.bf16.mxu1 %v2729_v37  ;;  %v777_v17 = vld [vmem:[#allocation3 + $0x58] sm:$0xff]  ;;  %v944_v36 = vld [vmem:[%s4250_s2 + $0x4c0] sm:$0xff]  ;;  %v986_v20 = vld [vmem:[%s4250_s2 + $0x610] sm:$0xff] }
 0x21a   : > { %2798 = vmatprep.subr.bf16.mxu0 %v2797_v41  ;;  %v945_v37 = vld [vmem:[%s4250_s2 + $0x4c8] sm:$0xff]  ;;  %v2815_v41 = vpack.c.bf16 %v961_v35, %v960_v34  ;;  %v987_v21 = vld [vmem:[%s4250_s2 + $0x618] sm:$0xff]  ;;  %v778_v23 = vld [vmem:[#allocation3 + $0x60] sm:$0xff] }
 0x21b   : > { %v2781_v44 = vpack.c.bf16 %v945_v37, %v944_v36  ;;  %v788_v27 = vld [vmem:[#allocation3 + $0xb0] sm:$0x7f]  ;;  %v1679_v31 = vld [vmem:[%s4251_s3 + $0x88] sm:$0xff]  ;;  %v1680_v35 = vld [vmem:[%s4251_s3 + $0x90] sm:$0xff] }
 0x21c   : > { %2732 = vmatpush3.bf16.msra.mxu1 %v2731_v48  ;;  %1291 = vmatmul.mubr.f32.vlgmr.msra.gmra.mrb[8].mxu0 %v772_v56  ;;  %v946_v48 = vld [vmem:[%s4250_s2 + $0x4d0] sm:$0xff]  ;;  %v789_v15 = vld [vmem:[#allocation3 + $0xb8] sm:$0x7f]  ;;  %v1678_v30 = vld [vmem:[%s4251_s3 + $0x80] sm:$0xff] }
 0x21d   : > { %1295 = vmatprep.mubr.f32.mxu0 %v786_v58  ;;  %2800 = vmatpush3.bf16.msra.mxu0 %v2799_v49  ;;  %v947_v49 = vld [vmem:[%s4250_s2 + $0x4d8] sm:$0xff]  ;;  %v965_v58 = vld [vmem:[%s4250_s2 + $0x568] sm:$0xff]  ;;  %v790_v25 = vld [vmem:[#allocation3 + $0xc0] sm:$0x7f] }
 0x21e   : > { %2766 = vmatprep.subr.bf16.mxu1 %v2765_v51  ;;  %2802 = vmatprep.subr.bf16.mxu0 %v2801_v53  ;;  %v981_v51 = vld [vmem:[%s4250_s2 + $0x5e8] sm:$0xff]  ;;  %v2819_v53 = vpack.c.bf16 %v963_v47, %v962_v46  ;;  %v2785_v56 = vpack.c.bf16 %v947_v49, %v946_v48  ;;  %v1681_v36 = vld [vmem:[%s4251_s3 + $0x98] sm:$0xff]  ;;  %v1664_v39 = vld [vmem:[%s4251_s3 + $0x10] sm:$0xff] }
 0x21f   : > { %1216 = vmatmul.mubr.f32.vlgmr.msra.gmra.mrb[6].mxu1 %v770_v4  ;;  %v2821_v57 = vpack.c.bf16 %v981_v51, %v980_v50  ;;  %v2825_v4 = vpack.c.bf16 %v983_v62, %v982_v61  ;;  %v1663_v34 = vld [vmem:[%s4251_s3 + $0x8] sm:$0xff]  ;;  %v2841_v38 = vpack.c.bf16 %v1681_v36, %v1680_v35  ;;  %v1684_v47 = vld [vmem:[%s4251_s3 + $0xb0] sm:$0xff]  ;;  %v1710_v48 = vld [vmem:[%s4251_s3 + $0x180] sm:$0xff] }
 0x220   : > { %1220 = vmatprep.mubr.f32.mxu1 %v784_v8  ;;  %1296 = vmatmul.mubr.f32.gmra.mrb[10].mxu0 %v785_v10  ;;  %v951_v8 = vld [vmem:[%s4250_s2 + $0x4f8] sm:$0xff]  ;;  %v984_v10 = vld [vmem:[%s4250_s2 + $0x600] sm:$0xff]  ;;  %v1683_v42 = vld [vmem:[%s4251_s3 + $0xa8] sm:$0xff] }
 0x221   : > { %2768 = vmatpush3.bf16.msra.mxu1 %v2767_v63  ;;  %2804 = vmatpush3.bf16.msra.mxu0 %v2803_v0  ;;  %v2787_v63 = vpack.c.bf16 %v931_v55, %v930_v54  ;;  %v2823_v0 = vpack.c.bf16 %v965_v58, %v964_v9  ;;  %v2793_v16 = vpack.c.bf16 %v951_v8, %v950_v7  ;;  %v1711_v49 = vld [vmem:[%s4251_s3 + $0x188] sm:$0xff]  ;;  %v1685_v50 = vld [vmem:[%s4251_s3 + $0xb8] sm:$0xff]  ;;  %v1696_v9 = vld [vmem:[%s4251_s3 + $0x110] sm:$0xff] }
 0x222   : > { %1440 = vmatprep.mubr.f32.mxu0 %v777_v17  ;;  %2770 = vmatprep.subr.bf16.mxu1 %v2769_v5  ;;  %v966_v5 = vld [vmem:[%s4250_s2 + $0x570] sm:$0xff]  ;;  %v2869_v51 = vpack.c.bf16 %v1711_v49, %v1710_v48  ;;  %v2849_v58 = vpack.c.bf16 %v1685_v50, %v1684_v47  ;;  %v1669_v60 = vld [vmem:[%s4251_s3 + $0x38] sm:$0xff] }
 0x223   : > { %1221 = vmatmul.mubr.f32.gmra.mrb[8].mxu1 %v783_v22  ;;  %2806 = vmatprep.subr.bf16.mxu0 %v2805_v11  ;;  %v985_v11 = vld [vmem:[%s4250_s2 + $0x608] sm:$0xff]  ;;  %v2827_v13 = vpack.c.bf16 %v967_v6, %v966_v5  ;;  %v934_v17 = vld [vmem:[%s4250_s2 + $0x470] sm:$0xff]  ;;  %v1697_v62 = vld [vmem:[%s4251_s3 + $0x118] sm:$0xff] }
 0x224   : > { %1365 = vmatprep.mubr.f32.mxu1 %v775_v26  ;;  %v774_v26 = vld [vmem:[#allocation3 + $0x40] sm:$0xff]  ;;  %v2875_v1 = vpack.c.bf16 %v1697_v62, %v1696_v9  ;;  %v1671_v5 = vld [vmem:[%s4251_s3 + $0x48] sm:$0xff]  ;;  %v1689_v7 = vld [vmem:[%s4251_s3 + $0xd8] sm:$0xff] }
 0x225   : > { %2772 = vmatpush3.bf16.msra.mxu1 %v2771_v18  ;;  %2808 = vmatpush3.bf16.msra.mxu0 %v2807_v19  ;;  %v935_v18 = vld [vmem:[%s4250_s2 + $0x478] sm:$0xff]  ;;  %v2829_v19 = vpack.c.bf16 %v985_v11, %v984_v10  ;;  %v1668_v59 = vld [vmem:[%s4251_s3 + $0x30] sm:$0xff]  ;;  %v1699_v9 = vld [vmem:[%s4251_s3 + $0x128] sm:$0xff] }
 0x226   : > { %2774 = vmatprep.subr.bf16.mxu1 %v2773_v14  ;;  %2810 = vmatprep.subr.bf16.mxu0 %v2809_v24  ;;  %v2795_v22 = vpack.c.bf16 %v935_v18, %v934_v17  ;;  %v776_v14 = vld [vmem:[#allocation3 + $0x50] sm:$0xff]  ;;  %v2833_v24 = vpack.c.bf16 %v987_v21, %v986_v20  ;;  %v2851_v2 = vpack.c.bf16 %v1669_v60, %v1668_v59  ;;  %v1688_v6 = vld [vmem:[%s4251_s3 + $0xd0] sm:$0xff]  ;;  %v1673_v48 = vld [vmem:[%s4251_s3 + $0x58] sm:$0xff] }
 0x227   : > { %v2857_v10 = vpack.c.bf16 %v1689_v7, %v1688_v6  ;;  %v2142_v17 = vld [vmem:[%s4253_s5] ss:$0 sm:$0xff]  ;;  %v1672_v47 = vld [vmem:[%s4251_s3 + $0x50] sm:$0xff]  ;;  %v1691_v62 = vld [vmem:[%s4251_s3 + $0xe8] sm:$0xff] }
 0x228   : > { %v1717_v6 = vld [vmem:[%s4251_s3 + $0x1b8] sm:$0xff] }
 0x229   : > { %2776 = vmatpush3.bf16.msra.mxu1 %v2775_v28  ;;  %2812 = vmatpush3.bf16.msra.mxu0 %v2811_v29  ;;  %v791_v28 = vld [vmem:[#allocation3 + $0xc8] sm:$0x7f] }
 0x22a   : > { %2778 = vmatprep.subr.bf16.mxu1 %v2777_v32  ;;  %2814 = vmatprep.subr.bf16.mxu0 %v2813_v33  ;;  %v787_v29 = vld [vmem:[#allocation3 + $0xa8] sm:$0x7f]  ;;  %v1662_v32 = vld [vmem:[%s4251_s3] sm:$0xff]  ;;  %v2837_v33 = vpack.c.bf16 %v1679_v31, %v1678_v30 }
 0x22b   : > { %v2839_v37 = vpack.c.bf16 %v1663_v34, %v1662_v32 }
 0x22d   : > { %2780 = vmatpush3.bf16.msra.mxu1 %v2779_v40  ;;  %2816 = vmatpush3.bf16.msra.mxu0 %v2815_v41  ;;  %v1665_v40 = vld [vmem:[%s4251_s3 + $0x18] sm:$0xff]  ;;  %v1682_v41 = vld [vmem:[%s4251_s3 + $0xa0] sm:$0xff] }
 0x22e   : > { %2782 = vmatprep.subr.bf16.mxu1 %v2781_v44  ;;  %2818 = vmatprep.subr.bf16.mxu0 %v2817_v45  ;;  %v2843_v43 = vpack.c.bf16 %v1665_v40, %v1664_v39  ;;  %v1666_v44 = vld [vmem:[%s4251_s3 + $0x20] sm:$0xff]  ;;  %v1667_v45 = vld [vmem:[%s4251_s3 + $0x28] sm:$0xff]  ;;  %v2845_v46 = vpack.c.bf16 %v1683_v42, %v1682_v41 }
 0x22f   : > { %v2847_v55 = vpack.c.bf16 %v1667_v45, %v1666_v44 }
 0x231   : > { %2784 = vmatpush3.bf16.msra.mxu1 %v2783_v52  ;;  %2820 = vmatpush3.bf16.msra.mxu0 %v2819_v53  ;;  %v1694_v52 = vld [vmem:[%s4251_s3 + $0x100] sm:$0xff]  ;;  %v1695_v53 = vld [vmem:[%s4251_s3 + $0x108] sm:$0xff] }
 0x232   : > { %2786 = vmatprep.subr.bf16.mxu1 %v2785_v56  ;;  %2822 = vmatprep.subr.bf16.mxu0 %v2821_v57  ;;  %v2871_v54 = vpack.c.bf16 %v1695_v53, %v1694_v52  ;;  %v1712_v56 = vld [vmem:[%s4251_s3 + $0x190] sm:$0xff]  ;;  %v1713_v57 = vld [vmem:[%s4251_s3 + $0x198] sm:$0xff]  ;;  %v1714_v52 = vld [vmem:[%s4251_s3 + $0x1a0] sm:$0xff] }
 0x233   : > { %v2873_v61 = vpack.c.bf16 %v1713_v57, %v1712_v56  ;;  %v1715_v53 = vld [vmem:[%s4251_s3 + $0x1a8] sm:$0xff]  ;;  %v1698_v57 = vld [vmem:[%s4251_s3 + $0x120] sm:$0xff] }
 0x234   : > { %v2877_v56 = vpack.c.bf16 %v1715_v53, %v1714_v52  ;;  %v2879_v60 = vpack.c.bf16 %v1699_v9, %v1698_v57  ;;  %v1722_v53 = vld [vmem:[%s4251_s3 + $0x1e0] sm:$0xff]  ;;  %v1723_v57 = vld [vmem:[%s4251_s3 + $0x1e8] sm:$0xff] }
 0x235   : > { %2788 = vmatpush3.bf16.msra.mxu1 %v2787_v63  ;;  %2824 = vmatpush3.bf16.msra.mxu0 %v2823_v0  ;;  %v1686_v63 = vld [vmem:[%s4251_s3 + $0xc0] sm:$0xff]  ;;  %v1687_v0 = vld [vmem:[%s4251_s3 + $0xc8] sm:$0xff] }
 0x236   : > { %2790 = vmatprep.subr.bf16.mxu1 %v2789_v3  ;;  %2826 = vmatprep.subr.bf16.mxu0 %v2825_v4  ;;  %v2853_v3 = vpack.c.bf16 %v1687_v0, %v1686_v63  ;;  %v1670_v4 = vld [vmem:[%s4251_s3 + $0x40] sm:$0xff] }
 0x237   : > { %v2855_v8 = vpack.c.bf16 %v1671_v5, %v1670_v4  ;;  %v1674_v0 = vld [vmem:[%s4251_s3 + $0x60] sm:$0xff]  ;;  %v1716_v5 = vld [vmem:[%s4251_s3 + $0x1b0] sm:$0xff] }
 0x238   : > { %v1706_v9 = vld [vmem:[%s4251_s3 + $0x160] sm:$0xff] }
 0x239   : > { %2792 = vmatpush3.bf16.msra.mxu1 %v2791_v12  ;;  %2828 = vmatpush3.bf16.msra.mxu0 %v2827_v13 }
 0x23a   : > { %2794 = vmatprep.subr.bf16.mxu1 %v2793_v16  ;;  %2830 = vmatprep.subr.bf16.mxu0 %v2829_v19 }
 0x23c   : > { %1441 = vmatmul.mubr.f32.vlgmr.msra.gmra.mrb[12].mxu0 %v776_v14 }
 0x23d   : > { %2796 = vmatpush3.bf16.msra.mxu1 %v2795_v22  ;;  %1445 = vmatprep.mubr.f32.mxu0 %v790_v25 }
 0x23e   : > { %2832 = vmatpush3.bf16.msra.mxu0 %v2829_v19  ;;  %2838 = vmatprep.subr.bf16.mxu1 %v2837_v33 }
 0x23f   : > { %2834 = vmatprep.subr.bf16.mxu0 %v2833_v24 }
 0x240   : > { %1366 = vmatmul.mubr.f32.vlgmr.msra.gmra.mrb[10].mxu1 %v774_v26  ;;  %1446 = vmatmul.mubr.f32.gmra.mrb[14].mxu0 %v789_v15 }
 0x241   : > { %1370 = vmatprep.mubr.f32.mxu1 %v788_v27  ;;  %2579 = vmatprep.mubr.msk.f32.mxu0 %vm632_vm4, %v778_v23 }
 0x242   : > { %2836 = vmatpush3.bf16.msra.mxu0 %v2833_v24  ;;  %2840 = vmatpush3.bf16.msra.mxu1 %v2839_v37 }
 0x243   : > { %2842 = vmatprep.subr.bf16.mxu1 %v2841_v38  ;;  %2870 = vmatprep.subr.bf16.mxu0 %v2869_v51  ;;  %v2859_v51 = vpack.c.bf16 %v1673_v48, %v1672_v47 }
 0x244   : > { %1371 = vmatmul.mubr.f32.gmra.mrb[12].mxu1 %v787_v29 }
 0x245   : > { %2580 = vmatmul.mubr.msk.f32.vlgmr.msra.gmra.mrb[16].mxu0 %vm632_vm4, %v791_v28  ;;  %vm4258_vm4 = vcmask 1044480  }
 0x246   : > { %2844 = vmatpush3.bf16.msra.mxu1 %v2843_v43  ;;  %2872 = vmatpush3.bf16.msra.mxu0 %v2871_v54 }
 0x247   : > { %2846 = vmatprep.subr.bf16.mxu1 %v2845_v46  ;;  %2874 = vmatprep.subr.bf16.mxu0 %v2873_v61  ;;  %v1690_v61 = vld [vmem:[%s4251_s3 + $0xe0] sm:$0xff] }
 0x248   : > { %v2861_v63 = vpack.c.bf16 %v1691_v62, %v1690_v61 }
 0x24a   : > { %2848 = vmatpush3.bf16.msra.mxu1 %v2847_v55  ;;  %2876 = vmatpush3.bf16.msra.mxu0 %v2875_v1  ;;  %v1675_v1 = vld [vmem:[%s4251_s3 + $0x68] sm:$0xff] }
 0x24b   : > { %2850 = vmatprep.subr.bf16.mxu1 %v2849_v58  ;;  %2878 = vmatprep.subr.bf16.mxu0 %v2877_v56  ;;  %v2863_v4 = vpack.c.bf16 %v1675_v1, %v1674_v0  ;;  %v2893_v1 = vpack.c.bf16 %v1723_v57, %v1722_v53 }
 0x24e   : > { %2852 = vmatpush3.bf16.msra.mxu1 %v2851_v2  ;;  %2880 = vmatpush3.bf16.msra.mxu0 %v2879_v60 }
 0x24f   : > { %2854 = vmatprep.subr.bf16.mxu1 %v2853_v3 }
 0x252   : > { %2856 = vmatpush3.bf16.msra.mxu1 %v2855_v8 }
 0x253   : > { %2858 = vmatprep.subr.bf16.mxu1 %v2857_v10  ;;  %v2881_v10 = vpack.c.bf16 %v1717_v6, %v1716_v5  ;;  %v1708_v6 = vld [vmem:[%s4251_s3 + $0x170] sm:$0xff] }
 0x255   : > { %2882 = vmatprep.subr.bf16.mxu0 %v2881_v10  ;;  %v1758_v10 = vld [vmem:[%s4251_s3 + $0x300] sm:$0xff] }
 0x256   : > { %2860 = vmatpush3.bf16.msra.mxu1 %v2859_v51 }
 0x257   : > { %2862 = vmatprep.subr.bf16.mxu1 %v2861_v63 }
 0x25a   : > { %2864 = vmatpush3.bf16.msra.mxu1 %v2863_v4  ;;  %v1725_v4 = vld [vmem:[%s4251_s3 + $0x1f8] sm:$0xff] }
 0x2cf   : > { %v2270_v11 = vpop.f32.mrb[4].mxu0 }
 0x2d0   : > { %v2271_v12 = vpop.f32.mrb[5].mxu0 }
 0x2d1   : > { %v2272_v13 = vadd.f32 %v2271_v12, %v2270_v11  ;;  %v2232_v16 = vpop.f32.mrb[2].mxu1  ;;  %v1700_v11 = vld [vmem:[%s4251_s3 + $0x130] sm:$0xff]  ;;  %v1701_v12 = vld [vmem:[%s4251_s3 + $0x138] sm:$0xff] }
 0x2d2   : > { %v2233_v18 = vpop.f32.mrb[3].mxu1 }
 0x2d3   : > { %v2234_v19 = vadd.f32 %v2233_v18, %v2232_v16 }
 0x2d5   : > { %v1068_v20 = vadd.f32 %v2234_v19, %v2142_v17  ;;  %v2883_v19 = vpack.c.bf16 %v1701_v12, %v1700_v11  ;;  %v1759_v11 = vld [vmem:[%s4251_s3 + $0x308] sm:$0xff] }
 0x2d6   : > { %v4138_v12 = vpack.c.bf16 %v1759_v11, %v1758_v10  ;;  %v1739_v10 = vld [vmem:[%s4251_s3 + $0x268] sm:$0xff] }
 0x2d7   : > { %v1143_v21 = vadd.f32 %v2272_v13, %v1068_v20  ;;  %v1692_v13 = vld [vmem:[%s4251_s3 + $0xf0] sm:$0xff]  ;;  %v1693_v20 = vld [vmem:[%s4251_s3 + $0xf8] sm:$0xff]  ;;  %2884 = vmatpush3.bf16.msra.mxu0 %v2883_v19  ;;  %v1726_v19 = vld [vmem:[%s4251_s3 + $0x200] sm:$0xff] }
 0x2d8   : > { %v1661_v11 = vld [vmem:[#allocation4 + $0x68] sm:$0x7f] }
 0x2e1   : > { %v2273_v22 = vpop.f32.mrb[6].mxu0 }
 0x2e2   : > { %v2274_v14 = vpop.f32.mrb[7].mxu0 }
 0x2e3   : > { %v2275_v24 = vadd.f32 %v2274_v14, %v2273_v22  ;;  %v1676_v22 = vld [vmem:[%s4251_s3 + $0x70] sm:$0xff]  ;;  %v1677_v14 = vld [vmem:[%s4251_s3 + $0x78] sm:$0xff] }
 0x2e4   : > { %v2235_v25 = vpop.f32.mrb[4].mxu1 }
 0x2e5   : > { %v2236_v23 = vpop.f32.mrb[5].mxu1 }
 0x2e6   : > { %v2237_v26 = vadd.f32 %v2236_v23, %v2235_v25  ;;  %v2867_v23 = vpack.c.bf16 %v1677_v14, %v1676_v22  ;;  %v1744_v14 = vld [vmem:[%s4251_s3 + $0x290] sm:$0xff] }
 0x2e8   : > { %v1073_v15 = vadd.f32 %v2237_v26, %v2142_v17  ;;  %v1718_v26 = vld [vmem:[%s4251_s3 + $0x1c0] sm:$0xff] }
 0x2ea   : > { %v1148_v27 = vadd.f32 %v2275_v24, %v1073_v15  ;;  %v1719_v15 = vld [vmem:[%s4251_s3 + $0x1c8] sm:$0xff] }
 0x2ef   : > { %v2346_v28 = vpop.f32.mrb[8].mxu0 }
 0x2f0   : > { %v2347_v29 = vpop.f32.mrb[9].mxu0 }
 0x2f1   : > { %v2348_v30 = vadd.f32 %v2347_v29, %v2346_v28  ;;  %v1702_v28 = vld [vmem:[%s4251_s3 + $0x140] sm:$0xff]  ;;  %v1703_v29 = vld [vmem:[%s4251_s3 + $0x148] sm:$0xff] }
 0x2f2   : > { %v2308_v31 = vpop.f32.mrb[6].mxu1 }
 0x2f3   : > { %v2309_v32 = vpop.f32.mrb[7].mxu1  ;;  %v2349_v33 = vpop.f32.mrb[10].mxu0 }
 0x2f4   : > { %v2310_v34 = vadd.f32 %v2309_v32, %v2308_v31  ;;  %v2350_v35 = vpop.f32.mrb[11].mxu0  ;;  %v2887_v32 = vpack.c.bf16 %v1703_v29, %v1702_v28 }
 0x2f5   : > { %v2351_v36 = vadd.f32 %v2350_v35, %v2349_v33  ;;  %v1742_v33 = vld [vmem:[%s4251_s3 + $0x280] sm:$0xff] }
 0x2f6   : > { %v1218_v37 = vadd.f32 %v2310_v34, %v1143_v21  ;;  %v2311_v38 = vpop.f32.mrb[8].mxu1  ;;  %v2865_v21 = vpack.c.bf16 %v1693_v20, %v1692_v13  ;;  %v1743_v34 = vld [vmem:[%s4251_s3 + $0x288] sm:$0xff] }
 0x2f7   : > { %v2312_v39 = vpop.f32.mrb[9].mxu1  ;;  %v2901_v35 = vpack.c.bf16 %v1743_v34, %v1742_v33  ;;  %v1727_v20 = vld [vmem:[%s4251_s3 + $0x208] sm:$0xff] }
 0x2f8   : > { %v2313_v40 = vadd.f32 %v2312_v39, %v2311_v38  ;;  %v1293_v41 = vadd.f32 %v2348_v30, %v1218_v37  ;;  %2866 = vmatprep.subr.bf16.mxu1 %v2865_v21  ;;  %v1720_v39 = vld [vmem:[%s4251_s3 + $0x1d0] sm:$0xff] }
 0x2f9   : > { %2868 = vmatpush3.bf16.msra.mxu1 %v2867_v23  ;;  %v2903_v23 = vpack.c.bf16 %v1727_v20, %v1726_v19  ;;  %v1741_v19 = vld [vmem:[%s4251_s3 + $0x278] sm:$0xff] }
 0x2fa   : > { %v1223_v42 = vadd.f32 %v2313_v40, %v1148_v27  ;;  %v2885_v27 = vpack.c.bf16 %v1719_v15, %v1718_v26  ;;  %v1721_v40 = vld [vmem:[%s4251_s3 + $0x1d8] sm:$0xff]  ;;  %2902 = vmatprep.subr.bf16.mxu1 %v2901_v35  ;;  %v1728_v15 = vld [vmem:[%s4251_s3 + $0x210] sm:$0xff]  ;;  %v1730_v35 = vld [vmem:[%s4251_s3 + $0x220] sm:$0xff] }
 0x2fc   : > { %v1298_v43 = vadd.f32 %v2351_v36, %v1223_v42  ;;  %2886 = vmatprep.subr.bf16.mxu0 %v2885_v27  ;;  %v1705_v42 = vld [vmem:[%s4251_s3 + $0x158] sm:$0xff] }
 0x2fd   : > { %2888 = vmatpush3.bf16.msra.mxu0 %v2887_v32  ;;  %v1729_v27 = vld [vmem:[%s4251_s3 + $0x218] sm:$0xff]  ;;  %v1747_v32 = vld [vmem:[%s4251_s3 + $0x2a8] sm:$0xff] }
 0x2fe   : > { %v2907_v33 = vpack.c.bf16 %v1729_v27, %v1728_v15 }
 0x30f   : > { %v2422_v44 = vpop.f32.mrb[12].mxu0 }
 0x310   : > { %v2423_v45 = vpop.f32.mrb[13].mxu0 }
 0x311   : > { %v2424_v46 = vadd.f32 %v2423_v45, %v2422_v44  ;;  %v2889_v44 = vpack.c.bf16 %v1721_v40, %v1720_v39  ;;  %v1748_v39 = vld [vmem:[%s4251_s3 + $0x2b0] sm:$0xff]  ;;  %v1749_v40 = vld [vmem:[%s4251_s3 + $0x2b8] sm:$0xff] }
 0x313   : > { %v2384_v49 = vpop.f32.mrb[10].mxu1  ;;  %v2425_v50 = vpop.f32.mrb[14].mxu0  ;;  %2890 = vmatprep.subr.bf16.mxu0 %v2889_v44  ;;  %v1733_v44 = vld [vmem:[%s4251_s3 + $0x238] sm:$0xff] }
 0x314   : > { %v2385_v54 = vpop.f32.mrb[11].mxu1  ;;  %v2426_v55 = vpop.f32.mrb[15].mxu0 }
 0x315   : > { %v2386_v58 = vadd.f32 %v2385_v54, %v2384_v49  ;;  %v2427_v59 = vadd.f32 %v2426_v55, %v2425_v50 }
 0x317   : > { %v1368_v2 = vadd.f32 %v2386_v58, %v1293_v41  ;;  %v2387_v3 = vpop.f32.mrb[12].mxu1  ;;  %v1704_v41 = vld [vmem:[%s4251_s3 + $0x150] sm:$0xff]  ;;  %v1707_v58 = vld [vmem:[%s4251_s3 + $0x168] sm:$0xff] }
 0x318   : > { %v2388_v7 = vpop.f32.mrb[13].mxu1  ;;  %v2581_v8 = vpop.f32.mrb[16].mxu0  ;;  %v2891_v45 = vpack.c.bf16 %v1705_v42, %v1704_v41  ;;  %v2913_v42 = vpack.c.bf16 %v1749_v40, %v1748_v39 }
 0x319   : > { %v2389_v16 = vadd.f32 %v2388_v7, %v2387_v3  ;;  %v1443_v17 = vadd.f32 %v2424_v46, %v1368_v2  ;;  %v1517_v18 = vpop.f32.mrb[17].mxu0  ;;  %v2895_v2 = vpack.c.bf16 %v1707_v58, %v1706_v9  ;;  %v1724_v3 = vld [vmem:[%s4251_s3 + $0x1f0] sm:$0xff]  ;;  %v1709_v7 = vld [vmem:[%s4251_s3 + $0x178] sm:$0xff] }
 0x31a   : > { %2892 = vmatpush3.bf16.msra.mxu0 %v2891_v45  ;;  %v2897_v5 = vpack.c.bf16 %v1725_v4, %v1724_v3  ;;  %v1753_v9 = vld [vmem:[%s4251_s3 + $0x2d8] sm:$0xff] }
 0x31b   : > { %v1373_v24 = vadd.f32 %v2389_v16, %v1298_v43  ;;  %v1518_v25 = vadd.f32 %v1517_v18, %v1443_v17  ;;  %2894 = vmatprep.subr.bf16.mxu0 %v2893_v1  ;;  %v1754_v1 = vld [vmem:[%s4251_s3 + $0x2e0] sm:$0xff] }
 0x31d   : > { %v1448_v30 = vadd.f32 %v2427_v59, %v1373_v24  ;;  %v1526_v31 = vmax.f32 %v1518_v25, 0.0  ;;  %v1745_v24 = vld [vmem:[%s4251_s3 + $0x298] sm:$0xff] }
 0x31e   : > { %2896 = vmatpush3.bf16.msra.mxu0 %v2895_v2  ;;  %v2905_v26 = vpack.c.bf16 %v1745_v24, %v1744_v14  ;;  %v1755_v2 = vld [vmem:[%s4251_s3 + $0x2e8] sm:$0xff] }
 0x31f   : > { %v1523_v36 = vadd.f32 %v2581_v8, %v1448_v30  ;;  %v1570_v37 = vrot.slane %v1526_v31, 7  ;;  %v1557_v38 = vrot.slane %v1526_v31, 6  ;;  %v1544_v46 = vrot.slane %v1526_v31, 5  ;;  %2898 = vmatprep.subr.bf16.mxu0 %v2897_v5  ;;  %v1654_v5 = vld [vmem:[#allocation4 + $0x30] sm:$0xff] }
 0x320   : > { %v1601_v47 = vrot.slane %v1526_v31, 1  ;;  %v1618_v48 = vrot.slane %v1526_v31, 2  ;;  %v1635_v55 = vrot.slane %v1526_v31, 3  ;;  %v2899_v8 = vpack.c.bf16 %v1709_v7, %v1708_v6 }
 0x321   : > { %v1527_v43 = vmax.f32 %v1523_v36, 0.0  ;;  %1573 = vrot.lane.b32.xlu1 %v1570_v37, %s2975_s27  ;;  %1560 = vrot.lane.b32.xlu0 %v1557_v38, %s2967_s29  ;;  %v1731_v36 = vld [vmem:[%s4251_s3 + $0x228] sm:$0xff]  ;;  %v2925_v7 = vpack.c.bf16 %v1755_v2, %v1754_v1 }
 0x322   : > { %2900 = vmatpush3.bf16.msra.mxu0 %v2899_v8  ;;  %v2911_v41 = vpack.c.bf16 %v1731_v36, %v1730_v35  ;;  %v1738_v8 = vld [vmem:[%s4251_s3 + $0x260] sm:$0xff] }
 0x323   : > { %v1602_v49 = vrot.slane %v1527_v43, 1  ;;  %v1558_v50 = vrot.slane %v1527_v43, 6  ;;  %v1545_v51 = vrot.slane %v1527_v43, 5  ;;  %v1571_v52 = vrot.slane %v1527_v43, 7  ;;  %2934 = vmatprep.subr.bf16.mxu0 %v4138_v12 }
 0x324   : > { %v1619_v54 = vrot.slane %v1527_v43, 2  ;;  %v1636_v56 = vrot.slane %v1527_v43, 3 }
 0x325   : > { %1547 = vrot.lane.b32.xlu0 %v1544_v46, %s2976_s18  ;;  %1606 = vrot.lane.b32.xlu1 %v1602_v49, %s2977_s19  ;;  %v1559_v59 = vsel %vm319_vm7, %v1557_v38, %v1558_v50  ;;  %v1546_v60 = vsel %vm305_vm6, %v1544_v46, %v1545_v51  ;;  %v1572_v61 = vsel %vm333_vm8, %v1570_v37, %v1571_v52  ;;  %vm1579_vm6 = vcmask 1048513   ;;  %v1734_v50 = vld [vmem:[%s4251_s3 + $0x240] sm:$0xff]  ;;  %v1735_v51 = vld [vmem:[%s4251_s3 + $0x248] sm:$0xff] }
 0x326   : > { %v1603_v62 = vsel %vm356_vm1, %v1601_v47, %v1602_v49  ;;  %v1620_v63 = vsel %vm369_vm0, %v1618_v48, %v1619_v54  ;;  %v1637_v0 = vsel %vm4258_vm4, %v1635_v55, %v1636_v56  ;;  %vm1581_vm0 = vcmask 457729   ;;  %v1750_v47 = vld [vmem:[%s4251_s3 + $0x2c0] sm:$0xff]  ;;  %v1751_v48 = vld [vmem:[%s4251_s3 + $0x2c8] sm:$0xff]  ;;  %v1752_v52 = vld [vmem:[%s4251_s3 + $0x2d0] sm:$0xff] }
 0x327   : > { %vm1566_vm1 = vcmask 588866   ;;  %vm1553_vm7 = vcmask 720067   ;;  %vm1616_vm8 = vcmask 193536   ;;  %vm1610_vm4 = vcmask 1048256  }
 0x328   : > { %v2917_v57 = vpack.c.bf16 %v1751_v48, %v1750_v47 }
 0x329   : > { %1587 = vrot.lane.b32.xlu0 %v1526_v31, %s2970_s12  ;;  %1562 = vrot.lane.b32.xlu1 %v1559_v59, %s2967_s29  ;;  %v1746_v31 = vld [vmem:[%s4251_s3 + $0x2a0] sm:$0xff] }
 0x32a   : > { %v2909_v34 = vpack.c.bf16 %v1747_v32, %v1746_v31 }
 0x32d   : > { %1589 = vrot.lane.b32.xlu0 %v1527_v43, %s2970_s12  ;;  %1549 = vrot.lane.b32.xlu1 %v1546_v60, %s2976_s18  ;;  %v1732_v43 = vld [vmem:[%s4251_s3 + $0x230] sm:$0xff] }
 0x32e   : > { %v2915_v49 = vpack.c.bf16 %v1733_v44, %v1732_v43 }
 0x331   : > { %1575 = vrot.lane.b32.xlu0 %v1572_v61, %s2975_s27  ;;  %1604 = vrot.lane.b32.xlu1 %v1603_v62, %s2977_s19  ;;  %v2919_v61 = vpack.c.bf16 %v1735_v51, %v1734_v50  ;;  %v2921_v62 = vpack.c.bf16 %v1753_v9, %v1752_v52 }
 0x335   : > { %1621 = vrot.lane.b32.xlu0 %v1620_v63, %s2969_s9  ;;  %1638 = vrot.lane.b32.xlu1 %v1637_v0, %s2978_s8  ;;  %v1736_v63 = vld [vmem:[%s4251_s3 + $0x250] sm:$0xff]  ;;  %v1737_v0 = vld [vmem:[%s4251_s3 + $0x258] sm:$0xff] }
 0x336   : > { %v2923_v6 = vpack.c.bf16 %v1737_v0, %v1736_v63 }
 0x339   : > { %1623 = vrot.lane.b32.xlu0 %v1619_v54, %s2969_s9  ;;  %1640 = vrot.lane.b32.xlu1 %v1636_v56, %s2978_s8 }
 0x393   : > { %v1574_v13 = vpop.permute.xlu1 %1573  ;;  %v1561_v16 = vpop.permute.xlu0 %1560 }
 0x394   : > { %1582 = vst.msk [vmem:[#allocation4 + $0x10] sm:$0xfe] %vm1581_vm0, %v1574_v13  ;;  %vm1612_vm0 = vcmask 195584  }
 0x395   : > { %1567 = vst.msk [vmem:[#allocation4 + $0x8] sm:$0xfc] %vm1566_vm1, %v1561_v16  ;;  %vm1597_vm1 = vcmask 1047360   ;;  %v2927_v16 = vpack.c.bf16 %v1739_v10, %v1738_v8 }
 0x396   : > { %1580 = vst.msk [vmem:[#allocation4 + $0x8] sm:$0xfe] %vm1579_vm6, %v1574_v13  ;;  %vm1627_vm6 = vcmask 1048128   ;;  %v1757_v13 = vld [vmem:[%s4251_s3 + $0x2f8] sm:$0xff] }
 0x397   : > { %v1548_v17 = vpop.permute.xlu0 %1547  ;;  %v1607_v18 = vpop.permute.xlu1 %1606 }
 0x398   : > { %1554 = vst.msk [vmem:[#allocation4] sm:$0xf8] %vm1553_vm7, %v1548_v17  ;;  %vm1629_vm7 = vcmask 64512  }
 0x399   : > { %1617 = vst.msk [vmem:[#allocation4 + $0x58] sm:$0x3f] %vm1616_vm8, %v1607_v18  ;;  %vm1644_vm8 = vcmask 982464  }
 0x39b   : > { %v1588_v21 = vpop.permute.xlu0 %1587  ;;  %v1563_v22 = vpop.permute.xlu1 %1562 }
 0x39c   : > { %1594 = vst.msk [vmem:[#allocation4 + $0x10] sm:$0xff] %vm1593_vm9, %v1588_v21  ;;  %vm1631_vm9 = vcmask 1045056  }
 0x39d   : > { %1596 = vst.msk [vmem:[#allocation4 + $0x18] sm:$0xff] %vm1595_vm12, %v1588_v21  ;;  %v1649_v25 = vld [vmem:[#allocation4 + $0x8] sm:$0xff]  ;;  %vm1633_vm12 = vcmask 61440  }
 0x39e   : > { %1569 = vst.msk [vmem:[#allocation4 + $0x40] sm:$0x7f] %vm1568_vm13, %v1563_v22  ;;  %1837 = vmatprep.mubr.f32.mxu1 %v1649_v25  ;;  %vm1646_vm13 = vcmask 978368  }
 0x39f   : > { %v1590_v28 = vpop.permute.xlu0 %1589  ;;  %v1550_v29 = vpop.permute.xlu1 %1549  ;;  %v1648_v30 = vld [vmem:[#allocation4] sm:$0xff] }
 0x3a0   : > { %1600 = vst.msk [vmem:[#allocation4 + $0x50] sm:$0x7f] %vm1599_vm14, %v1590_v28  ;;  %1838 = vmatmul.mubr.f32.vlgmr.msra.gmra.mrb[14].mxu1 %v1648_v30 }
 0x3a1   : > { %1556 = vst.msk [vmem:[#allocation4 + $0x38] sm:$0x7f] %vm1555_vm3, %v1550_v29  ;;  %2904 = vmatpush3.bf16.msra.mxu1 %v2903_v23 }
 0x3a2   : > { %1615 = vst.msk [vmem:[#allocation4 + $0x50] sm:$0x3f] %vm1614_vm5, %v1607_v18  ;;  %2906 = vmatprep.subr.bf16.mxu1 %v2905_v26  ;;  %v1740_v18 = vld [vmem:[%s4251_s3 + $0x270] sm:$0xff]  ;;  %v2145_v26 = vld [vmem:[%s4254_s6] ss:$0 sm:$0xff] }
 0x3a3   : > { %v1576_v37 = vpop.permute.xlu0 %1575  ;;  %v1605_v38 = vpop.permute.xlu1 %1604  ;;  %v1650_v58 = vld [vmem:[#allocation4 + $0x10] sm:$0xff]  ;;  %v2931_v20 = vpack.c.bf16 %v1741_v19, %v1740_v18 }
 0x3a4   : > { %1584 = vst.msk [vmem:[#allocation4 + $0x40] sm:$0x7f] %vm1583_vm10, %v1576_v37 }
 0x3a5   : > { %1586 = vst.msk [vmem:[#allocation4 + $0x48] sm:$0x7f] %vm1585_vm11, %v1576_v37  ;;  %2908 = vmatpush3.bf16.msra.mxu1 %v2907_v33 }
 0x3a6   : > { %1611 = vst.msk [vmem:[#allocation4 + $0x18] sm:$0xff] %vm1610_vm4, %v1605_v38  ;;  %2910 = vmatprep.subr.bf16.mxu1 %v2909_v34 }
 0x3a7   : > { %1613 = vst.msk [vmem:[#allocation4 + $0x20] sm:$0xff] %vm1612_vm0, %v1605_v38  ;;  %v1622_v45 = vpop.permute.xlu0 %1621  ;;  %v1639_v46 = vpop.permute.xlu1 %1638 }
 0x3a8   : > { %1598 = vst.msk [vmem:[#allocation4 + $0x48] sm:$0x7f] %vm1597_vm1, %v1590_v28  ;;  %v1655_v59 = vld [vmem:[#allocation4 + $0x38] sm:$0x7f] }
 0x3a9   : > { %1628 = vst.msk [vmem:[#allocation4 + $0x20] sm:$0xff] %vm1627_vm6, %v1622_v45  ;;  %2912 = vmatpush3.bf16.msra.mxu1 %v2911_v41  ;;  %v1658_v60 = vld [vmem:[#allocation4 + $0x50] sm:$0x7f] }
 0x3aa   : > { %1630 = vst.msk [vmem:[#allocation4 + $0x28] sm:$0xff] %vm1629_vm7, %v1622_v45  ;;  %2914 = vmatprep.subr.bf16.mxu1 %v2913_v42 }
 0x3ab   : > { %1645 = vst.msk [vmem:[#allocation4 + $0x28] sm:$0xff] %vm1644_vm8, %v1639_v46  ;;  %v1624_v53 = vpop.permute.xlu0 %1623  ;;  %v1641_v54 = vpop.permute.xlu1 %1640  ;;  %v1656_v55 = vld [vmem:[#allocation4 + $0x40] sm:$0x7f] }
 0x3ac   : > { %1632 = vst.msk [vmem:[#allocation4 + $0x58] sm:$0x1f] %vm1631_vm9, %v1624_v53  ;;  %1842 = vmatprep.mubr.f32.mxu1 %v1656_v55 }
 0x3ad   : > { %v1651_v56 = vld [vmem:[#allocation4 + $0x18] sm:$0xff]  ;;  %1634 = vst.msk [vmem:[#allocation4 + $0x60] sm:$0x1f] %vm1633_vm12, %v1624_v53  ;;  %2916 = vmatpush3.bf16.msra.mxu1 %v2915_v49 }
 0x3ae   : > { %1912 = vmatprep.mubr.f32.mxu0 %v1651_v56  ;;  %1647 = vst.msk [vmem:[#allocation4 + $0x60] sm:$0xf] %vm1646_vm13, %v1641_v54  ;;  %1843 = vmatmul.mubr.f32.gmra.mrb[16].mxu1 %v1655_v59 }
 0x3af   : > { %1913 = vmatmul.mubr.f32.vlgmr.msra.gmra.mrb[18].mxu0 %v1650_v58  ;;  %2918 = vmatprep.subr.bf16.mxu1 %v2917_v57  ;;  %v1657_v3 = vld [vmem:[#allocation4 + $0x48] sm:$0x7f] }
 0x3b0   : > { %1917 = vmatprep.mubr.f32.mxu0 %v1658_v60  ;;  %2936 = vmatpush3.bf16.msra.mxu0 %v4138_v12  ;;  %v1756_v12 = vld [vmem:[%s4251_s3 + $0x2f0] sm:$0xff]  ;;  %v1652_v21 = vld [vmem:[#allocation4 + $0x20] sm:$0xff] }
 0x3b1   : > { %2920 = vmatpush3.bf16.msra.mxu1 %v2919_v61  ;;  %v2929_v17 = vpack.c.bf16 %v1757_v13, %v1756_v12 }
 0x3b2   : > { %v1653_v4 = vld [vmem:[#allocation4 + $0x28] sm:$0xff]  ;;  %2922 = vmatprep.subr.bf16.mxu1 %v2921_v62 }
 0x3b3   : > { %1918 = vmatmul.mubr.f32.gmra.mrb[20].mxu0 %v1657_v3  ;;  %1987 = vmatprep.mubr.f32.mxu1 %v1653_v4  ;;  %v1659_v14 = vld [vmem:[#allocation4 + $0x58] sm:$0x7f] }
 0x3b4   : > { %2586 = vmatprep.mubr.msk.f32.mxu0 %vm743_vm15, %v1654_v5 }
 0x3b5   : > { %2924 = vmatpush3.bf16.msra.mxu1 %v2923_v6  ;;  %v1660_v22 = vld [vmem:[#allocation4 + $0x60] sm:$0x7f] }
 0x3b6   : > { %2926 = vmatprep.subr.bf16.mxu1 %v2925_v7 }
 0x3b7   : > { %2587 = vmatmul.mubr.msk.f32.vlgmr.msra.gmra.mrb[22].mxu0 %vm743_vm15, %v1661_v11 }
 0x3b9   : > { %2928 = vmatpush3.bf16.msra.mxu1 %v2927_v16 }
 0x3ba   : > { %2930 = vmatprep.subr.bf16.mxu1 %v2929_v17 }
 0x3bd   : > { %2932 = vmatpush3.bf16.msra.mxu1 %v2931_v20 }
 0x3c0   : > { %1988 = vmatmul.mubr.f32.vlgmr.msra.gmra.mrb[18].mxu1 %v1652_v21 }
 0x3c1   : > { %1992 = vmatprep.mubr.f32.mxu1 %v1660_v22 }
 0x3c4   : > { %1993 = vmatmul.mubr.f32.gmra.mrb[20].mxu1 %v1659_v14 }
 0x473   : > { %v2466_v24 = vpop.f32.mrb[14].mxu1 }
 0x474   : > { %v2467_v25 = vpop.f32.mrb[15].mxu1 }
 0x475   : > { %v2468_v23 = vadd.f32 %v2467_v25, %v2466_v24 }
 0x477   : > { %v1840_v29 = vadd.f32 %v2468_v23, %v2145_v26 }
 0x481   : > { %v2469_v27 = vpop.f32.mrb[16].mxu1 }
 0x482   : > { %v2504_v15 = vpop.f32.mrb[18].mxu0  ;;  %v2470_v30 = vpop.f32.mrb[17].mxu1 }
 0x483   : > { %v2505_v28 = vpop.f32.mrb[19].mxu0  ;;  %v2471_v32 = vadd.f32 %v2470_v30, %v2469_v27 }
 0x484   : > { %v2506_v31 = vadd.f32 %v2505_v28, %v2504_v15 }
 0x485   : > { %v1845_v36 = vadd.f32 %v2471_v32, %v2145_v26 }
 0x486   : > { %v1915_v33 = vadd.f32 %v2506_v31, %v1840_v29  ;;  %v2507_v34 = vpop.f32.mrb[20].mxu0 }
 0x487   : > { %v2508_v35 = vpop.f32.mrb[21].mxu0 }
 0x488   : > { %v2509_v37 = vadd.f32 %v2508_v35, %v2507_v34 }
 0x48a   : > { %v1920_v38 = vadd.f32 %v2509_v37, %v1845_v36  ;;  %v2588_v39 = vpop.f32.mrb[22].mxu0 }
 0x48b   : > { %v2064_v40 = vpop.f32.mrb[23].mxu0 }
 0x493   : > { %v2542_v41 = vpop.f32.mrb[18].mxu1 }
 0x494   : > { %v2543_v42 = vpop.f32.mrb[19].mxu1 }
 0x495   : > { %v2544_v43 = vadd.f32 %v2543_v42, %v2542_v41 }
 0x497   : > { %v2545_v44 = vpop.f32.mrb[20].mxu1  ;;  %v1990_v45 = vadd.f32 %v2544_v43, %v1915_v33 }
 0x498   : > { %v2546_v46 = vpop.f32.mrb[21].mxu1 }
 0x499   : > { %v2547_v47 = vadd.f32 %v2546_v46, %v2545_v44  ;;  %v2065_v48 = vadd.f32 %v2064_v40, %v1990_v45 }
 0x49b   : > { %v1995_v49 = vadd.f32 %v2547_v47, %v1920_v38  ;;  %2073 = vst.msk [vmem:[%s278_s16] sm:$0xff] %vm743_vm15, %v2065_v48 }
 0x49d   : > { %v2070_v50 = vadd.f32 %v2588_v39, %v1995_v49 }
 0x49f   : > { %2074 = vst.msk [vmem:[%s278_s16 + $0x8] sm:$0x7f] %vm682_vm2, %v2070_v50 }
 0x4a0 PF: > { %s17_s24 = sadd.s32 1, %s2964_s24  }
 0x4a1   : > { %p14_p4 = scmp.ge.s32.totalorder %s17_s24, 4  }
 0x4a3   :  { %16 = sbr.rel (!%p14_p4) target bundleno = 1 (0x1), region = 78 }

</bundles_post_ra>
